<compile_context>
chip_gen: v7x
topology: tpu7x:2x2x1
jax: 0.10.0
libtpu: 0.0.40
codegen_flags: <defaults>
</compile_context>

<pallas_src>
from functools import partial

import jax
import jax.numpy as jnp
from jax.experimental import pallas as pl
from jax.experimental.pallas import tpu as pltpu

# ----------------------------- model config (small) -------------------------
BATCH = 2
IN_C = 4
IMG = 16
PATCH = 4
EMBED = 32
DEPTH = 2
HEADS = 4
HEAD_DIM = EMBED // HEADS
MLP_RATIO = 4.0
MLP_HIDDEN = int(EMBED * MLP_RATIO)
NUM_CLASSES = 10
GRID = IMG // PATCH
NUM_PATCHES = GRID * GRID
NUM_TOKENS = 1                      # no distillation token
SEQ = NUM_PATCHES + NUM_TOKENS      # 17
ROWS = BATCH * SEQ                  # 34
LN_EPS = 1e-6

_VMEM = pl.BlockSpec(memory_space=pltpu.MemorySpace.VMEM)


# ------------------------------ in-kernel helpers ----------------------------
def _layernorm(x, g, b):
    # biased variance, eps=1e-6 -> matches torch.nn.LayerNorm
    mean = jnp.mean(x, axis=-1, keepdims=True)
    var = jnp.mean((x - mean) ** 2, axis=-1, keepdims=True)
    return (x - mean) * jax.lax.rsqrt(var + LN_EPS) * g + b


def _erf_f32(x):
    # TODO(synk): uses A&S 7.1.26 polynomial erf (max abs err ~1.5e-7, i.e. at
    # f32 noise level) instead of lax.erf, to avoid depending on a Mosaic erf
    # lowering inside the fused kernel.
    a1, a2, a3, a4, a5 = (0.254829592, -0.284496736, 1.421413741,
                          -1.453152027, 1.061405429)
    p = 0.3275911
    ax = jnp.abs(x)
    t = 1.0 / (1.0 + p * ax)
    poly = ((((a5 * t + a4) * t + a3) * t + a2) * t + a1) * t
    y = 1.0 - poly * jnp.exp(-ax * ax)
    return jnp.where(x >= 0.0, y, -y)


def _gelu_exact(x):
    # exact (erf-based) GELU, like torch.nn.GELU()
    return 0.5 * x * (1.0 + _erf_f32(x * 0.7071067811865476))


# ------------------------------- fused block kernel ---------------------------
def _block_kernel(x_ref,
                  ln1_g_ref, ln1_b_ref, qkv_w_ref, qkv_b_ref,
                  proj_w_ref, proj_b_ref,
                  ln2_g_ref, ln2_b_ref, fc1_w_ref, fc1_b_ref,
                  fc2_w_ref, fc2_b_ref,
                  o_ref,
                  attn_ref,
                  *, batch, seq, heads, head_dim, scale):
    d = heads * head_dim
    x = x_ref[...].astype(jnp.float32)                       # (B*N, D)

    # ---- attention branch: LN1 + qkv (one MXU matmul for all tokens) ----
    h = _layernorm(x, ln1_g_ref[...], ln1_b_ref[...])
    qkv = (jnp.dot(h, qkv_w_ref[...], preferred_element_type=jnp.float32)
           + qkv_b_ref[...])                                 # (B*N, 3D)

    # all (batch, head) pairs inside this single kernel invocation;
    # results are packed EMBED-wide into VMEM scratch (one proj matmul later).
    for bi in range(batch):
        r0 = bi * seq
        for hi in range(heads):
            c0 = hi * head_dim
            q = qkv[r0:r0 + seq, c0:c0 + head_dim]           # (N, hd)
            k = qkv[r0:r0 + seq, d + c0:d + c0 + head_dim]   # (N, hd)
            v = qkv[r0:r0 + seq, 2 * d + c0:2 * d + c0 + head_dim]
            # q . k^T via dot_general contracting the last dims (no transpose)
            s = jax.lax.dot_general(
                q, k, (((1,), (1,)), ((), ())),
                preferred_element_type=jnp.float32) * scale  # (N, N)
            s = s - jnp.max(s, axis=-1, keepdims=True)
            p = jnp.exp(s)
            p = p * pl.reciprocal(jnp.sum(p, axis=-1, keepdims=True),
                                  approx=False)
            o = jax.lax.dot_general(
                p, v, (((1,), (0,)), ((), ())),
                preferred_element_type=jnp.float32)          # (N, hd)
            attn_ref[r0:r0 + seq, c0:c0 + head_dim] = o

    # proj + residual
    a = attn_ref[...]
    x = x + (jnp.dot(a, proj_w_ref[...], preferred_element_type=jnp.float32)
             + proj_b_ref[...])

    # ---- MLP branch: LN2 + fc1 + GELU + fc2 + residual (all fused) ----
    h = _layernorm(x, ln2_g_ref[...], ln2_b_ref[...])
    h = (jnp.dot(h, fc1_w_ref[...], preferred_element_type=jnp.float32)
         + fc1_b_ref[...])
    h = _gelu_exact(h)
    x = x + (jnp.dot(h, fc2_w_ref[...], preferred_element_type=jnp.float32)
             + fc2_b_ref[...])

    o_ref[...] = x.astype(o_ref.dtype)


def pallas_block(x2d, blk):
    m, dmodel = x2d.shape
    kernel = partial(_block_kernel, batch=BATCH, seq=SEQ, heads=HEADS,
                     head_dim=HEAD_DIM, scale=HEAD_DIM ** (-0.5))
    return pl.pallas_call(
        kernel,
        out_shape=jax.ShapeDtypeStruct((m, dmodel), x2d.dtype),
        in_specs=[_VMEM] * 13,
        out_specs=_VMEM,
        scratch_shapes=[pltpu.VMEM((m, dmodel), jnp.float32)],
    )(x2d,
      blk["ln1_g"], blk["ln1_b"], blk["qkv_w"], blk["qkv_b"],
      blk["proj_w"], blk["proj_b"],
      blk["ln2_g"], blk["ln2_b"], blk["fc1_w"], blk["fc1_b"],
      blk["fc2_w"], blk["fc2_b"])


# ------------------------------ parameter init --------------------------------
def _trunc_normal(key, shape, std):
    return std * jax.random.truncated_normal(key, -2.0, 2.0, shape, jnp.float32)


def init_params(key):
    params = {}
    keys = jax.random.split(key, 4 + DEPTH)

    # PatchEmbed conv (kernel = stride = patch) -> matmul weight (C*ph*pw, D)
    fan_out = EMBED * PATCH * PATCH
    kaiming_std = (2.0 / fan_out) ** 0.5
    params["patch_w"] = kaiming_std * jax.random.normal(
        keys[0], (IN_C * PATCH * PATCH, EMBED), jnp.float32)
    params["patch_b"] = jnp.zeros((EMBED,), jnp.float32)

    params["cls_token"] = _trunc_normal(keys[1], (1, 1, EMBED), 0.02)
    params["pos_embed"] = _trunc_normal(keys[2], (1, SEQ, EMBED), 0.02)

    blocks = []
    for d in range(DEPTH):
        bk = jax.random.split(keys[3 + d], 4)
        # biases / LN affine params stored pre-broadcast as (1, n): hoists the
        # per-call reshape out of the hot path.
        blk = {
            "ln1_g": jnp.ones((1, EMBED), jnp.float32),
            "ln1_b": jnp.zeros((1, EMBED), jnp.float32),
            "qkv_w": _trunc_normal(bk[0], (EMBED, 3 * EMBED), 0.01),
            "qkv_b": jnp.zeros((1, 3 * EMBED), jnp.float32),
            "proj_w": _trunc_normal(bk[1], (EMBED, EMBED), 0.01),
            "proj_b": jnp.zeros((1, EMBED), jnp.float32),
            "ln2_g": jnp.ones((1, EMBED), jnp.float32),
            "ln2_b": jnp.zeros((1, EMBED), jnp.float32),
            "fc1_w": _trunc_normal(bk[2], (EMBED, MLP_HIDDEN), 0.01),
            "fc1_b": jnp.zeros((1, MLP_HIDDEN), jnp.float32),
            "fc2_w": _trunc_normal(bk[3], (MLP_HIDDEN, EMBED), 0.01),
            "fc2_b": jnp.zeros((1, EMBED), jnp.float32),
        }
        blocks.append(blk)
    params["blocks"] = blocks

    params["norm_g"] = jnp.ones((EMBED,), jnp.float32)
    params["norm_b"] = jnp.zeros((EMBED,), jnp.float32)
    # representation_size=None -> pre_logits is Identity
    params["head_w"] = _trunc_normal(keys[3 + DEPTH], (EMBED, NUM_CLASSES), 0.01)
    params["head_b"] = jnp.zeros((NUM_CLASSES,), jnp.float32)
    return params


# ------------------------------- forward pass ---------------------------------
def vit_forward(x, params):
    B, C, H, W = x.shape
    assert H == IMG and W == IMG and C == IN_C

    # --- PatchEmbed (conv k=s=patch == patch-flatten + matmul) + cls token +
    #     pos embed: kept in plain JAX (tiny; XLA fuses it; a pallas_call here
    #     would be pure launch overhead).  pos_drop is identity (p=0).
    patches = (
        x.reshape(B, C, GRID, PATCH, GRID, PATCH)
        .transpose(0, 2, 4, 1, 3, 5)                        # (B, Gh, Gw, C, ph, pw)
        .reshape(B, NUM_PATCHES, C * PATCH * PATCH)
    )
    tok = jnp.einsum("bpk,kd->bpd", patches, params["patch_w"]) + params["patch_b"]
    cls = jnp.broadcast_to(params["cls_token"], (B, 1, EMBED))
    xs = jnp.concatenate([cls, tok], axis=1) + params["pos_embed"]   # (B, SEQ, D)

    # --- transformer: ONE fused Pallas kernel per block ---
    x2d = xs.reshape(B * SEQ, EMBED)
    for blk in params["blocks"]:
        x2d = pallas_block(x2d, blk)

    # --- final norm + cls readout + head: plain JAX (per review, the 10-wide
    #     head output would be a masked partial store in Pallas).  LayerNorm is
    #     per-token, so applying it to the cls token only is identical to
    #     norming all tokens and then selecting token 0.
    cls_tok = x2d.reshape(B, SEQ, EMBED)[:, 0]              # (B, D)
    mean = jnp.mean(cls_tok, axis=-1, keepdims=True)
    var = jnp.mean((cls_tok - mean) ** 2, axis=-1, keepdims=True)
    cls_n = (cls_tok - mean) * jax.lax.rsqrt(var + LN_EPS) * params["norm_g"] \
        + params["norm_b"]
    logits = cls_n @ params["head_w"] + params["head_b"]    # pre_logits = Identity
    return logits                                           # (B, num_classes)


# ------------------------------------ main -------------------------------------
if __name__ == "__main__":
    key = jax.random.PRNGKey(0)
    k_params, k_x = jax.random.split(key)
    params = init_params(k_params)
    x = jax.random.normal(k_x, (BATCH, IN_C, IMG, IMG), jnp.float32)  # NCHW

    logits = jax.jit(vit_forward)(x, params)
    jax.block_until_ready(logits)
    assert logits.shape == (BATCH, NUM_CLASSES)
    assert bool(jnp.all(jnp.isfinite(logits)))
    print("KERNEL_OK")
</pallas_src>

<mosaic_0001>
module attributes {stable_mosaic.version = 11 : i64} {
  func.func @_block_kernel(%arg0: memref<34x32xf32, #tpu.memory_space<vmem>>, %arg1: memref<1x32xf32, #tpu.memory_space<vmem>>, %arg2: memref<1x32xf32, #tpu.memory_space<vmem>>, %arg3: memref<32x96xf32, #tpu.memory_space<vmem>>, %arg4: memref<1x96xf32, #tpu.memory_space<vmem>>, %arg5: memref<32x32xf32, #tpu.memory_space<vmem>>, %arg6: memref<1x32xf32, #tpu.memory_space<vmem>>, %arg7: memref<1x32xf32, #tpu.memory_space<vmem>>, %arg8: memref<1x32xf32, #tpu.memory_space<vmem>>, %arg9: memref<32x128xf32, #tpu.memory_space<vmem>>, %arg10: memref<1x128xf32, #tpu.memory_space<vmem>>, %arg11: memref<128x32xf32, #tpu.memory_space<vmem>>, %arg12: memref<1x32xf32, #tpu.memory_space<vmem>>, %arg13: memref<34x32xf32, #tpu.memory_space<vmem>>, %arg14: memref<34x32xf32, #tpu.memory_space<vmem>>) attributes {dimension_semantics = [], scalar_prefetch = 0 : i64, scratch_operands = 1 : i64, tpu.core_type = #tpu.core_type<tc>} {
    %c0 = arith.constant 0 : index
    %c0_0 = arith.constant 0 : index
    %0 = vector.load %arg0[%c0, %c0_0] : memref<34x32xf32, #tpu.memory_space<vmem>>, vector<34x32xf32>
    %c0_1 = arith.constant 0 : index
    %c0_2 = arith.constant 0 : index
    %1 = vector.load %arg1[%c0_1, %c0_2] : memref<1x32xf32, #tpu.memory_space<vmem>>, vector<1x32xf32>
    %c0_3 = arith.constant 0 : index
    %c0_4 = arith.constant 0 : index
    %2 = vector.load %arg2[%c0_3, %c0_4] : memref<1x32xf32, #tpu.memory_space<vmem>>, vector<1x32xf32>
    %cst = arith.constant dense<0.000000e+00> : vector<34xf32>
    %3 = vector.multi_reduction <add>, %0, %cst [1] : vector<34x32xf32> to vector<34xf32>
    %4 = vector.shape_cast %3 : vector<34xf32> to vector<34x1xf32>
    %cst_5 = arith.constant 3.200000e+01 : f32
    %5 = vector.broadcast %cst_5 : f32 to vector<34x1xf32>
    %6 = arith.divf %4, %5 : vector<34x1xf32>
    %7 = vector.broadcast %6 : vector<34x1xf32> to vector<34x32xf32>
    %8 = arith.subf %0, %7 : vector<34x32xf32>
    %9 = arith.mulf %8, %8 : vector<34x32xf32>
    %cst_6 = arith.constant dense<0.000000e+00> : vector<34xf32>
    %10 = vector.multi_reduction <add>, %9, %cst_6 [1] : vector<34x32xf32> to vector<34xf32>
    %11 = vector.shape_cast %10 : vector<34xf32> to vector<34x1xf32>
    %cst_7 = arith.constant 3.200000e+01 : f32
    %12 = vector.broadcast %cst_7 : f32 to vector<34x1xf32>
    %13 = arith.divf %11, %12 : vector<34x1xf32>
    %14 = vector.broadcast %6 : vector<34x1xf32> to vector<34x32xf32>
    %15 = arith.subf %0, %14 : vector<34x32xf32>
    %cst_8 = arith.constant 9.99999997E-7 : f32
    %16 = vector.broadcast %cst_8 : f32 to vector<34x1xf32>
    %17 = arith.addf %13, %16 : vector<34x1xf32>
    %18 = math.rsqrt %17 : vector<34x1xf32>
    %19 = vector.broadcast %18 : vector<34x1xf32> to vector<34x32xf32>
    %20 = arith.mulf %15, %19 : vector<34x32xf32>
    %21 = vector.broadcast %1 : vector<1x32xf32> to vector<34x32xf32>
    %22 = arith.mulf %20, %21 : vector<34x32xf32>
    %23 = vector.broadcast %2 : vector<1x32xf32> to vector<34x32xf32>
    %24 = arith.addf %22, %23 : vector<34x32xf32>
    %c0_9 = arith.constant 0 : index
    %c0_10 = arith.constant 0 : index
    %25 = vector.load %arg3[%c0_9, %c0_10] : memref<32x96xf32, #tpu.memory_space<vmem>>, vector<32x96xf32>
    %cst_11 = arith.constant dense<0.000000e+00> : vector<34x96xf32>
    %26 = tpu.matmul %24, %25, %cst_11 {dimension_numbers = #tpu.dot_dimension_numbers<[1], [0], [0], [1], [0, 0, 1, 1], [], []>} : vector<34x32xf32>, vector<32x96xf32>, vector<34x96xf32> -> vector<34x96xf32>
    %c0_12 = arith.constant 0 : index
    %c0_13 = arith.constant 0 : index
    %27 = vector.load %arg4[%c0_12, %c0_13] : memref<1x96xf32, #tpu.memory_space<vmem>>, vector<1x96xf32>
    %28 = vector.broadcast %27 : vector<1x96xf32> to vector<34x96xf32>
    %29 = arith.addf %26, %28 : vector<34x96xf32>
    %30 = vector.extract_strided_slice %29 {offsets = [0, 0], sizes = [17, 8], strides = [1, 1]} : vector<34x96xf32> to vector<17x8xf32>
    %31 = vector.extract_strided_slice %29 {offsets = [0, 32], sizes = [17, 8], strides = [1, 1]} : vector<34x96xf32> to vector<17x8xf32>
    %32 = vector.extract_strided_slice %29 {offsets = [0, 64], sizes = [17, 8], strides = [1, 1]} : vector<34x96xf32> to vector<17x8xf32>
    %cst_14 = arith.constant dense<0.000000e+00> : vector<17x17xf32>
    %33 = tpu.matmul %30, %31, %cst_14 {dimension_numbers = #tpu.dot_dimension_numbers<[1], [1], [0], [0], [0, 0, 1, 0], [], []>} : vector<17x8xf32>, vector<17x8xf32>, vector<17x17xf32> -> vector<17x17xf32>
    %cst_15 = arith.constant 0.353553385 : f32
    %34 = vector.broadcast %cst_15 : f32 to vector<17x17xf32>
    %35 = arith.mulf %33, %34 : vector<17x17xf32>
    %cst_16 = arith.constant dense<0xFF800000> : vector<17xf32>
    %36 = vector.multi_reduction <maximumf>, %35, %cst_16 [1] : vector<17x17xf32> to vector<17xf32>
    %37 = vector.shape_cast %36 : vector<17xf32> to vector<17x1xf32>
    %38 = vector.broadcast %37 : vector<17x1xf32> to vector<17x17xf32>
    %39 = arith.subf %35, %38 : vector<17x17xf32>
    %40 = math.exp %39 : vector<17x17xf32>
    %cst_17 = arith.constant dense<0.000000e+00> : vector<17xf32>
    %41 = vector.multi_reduction <add>, %40, %cst_17 [1] : vector<17x17xf32> to vector<17xf32>
    %42 = vector.shape_cast %41 : vector<17xf32> to vector<17x1xf32>
    %43 = tpu.reciprocal %42 : vector<17x1xf32> -> vector<17x1xf32>
    %44 = vector.broadcast %43 : vector<17x1xf32> to vector<17x17xf32>
    %45 = arith.mulf %40, %44 : vector<17x17xf32>
    %cst_18 = arith.constant dense<0.000000e+00> : vector<17x8xf32>
    %46 = tpu.matmul %45, %32, %cst_18 {dimension_numbers = #tpu.dot_dimension_numbers<[1], [0], [0], [1], [0, 0, 1, 1], [], []>} : vector<17x17xf32>, vector<17x8xf32>, vector<17x8xf32> -> vector<17x8xf32>
    %c0_19 = arith.constant 0 : index
    %c0_20 = arith.constant 0 : index
    %47 = vector.load %arg14[%c0_19, %c0_20] : memref<34x32xf32, #tpu.memory_space<vmem>>, vector<17x8xf32>
    tpu.vector_store %arg14[%c0_19, %c0_20], %46 {strides = array<i32>} : memref<34x32xf32, #tpu.memory_space<vmem>>, vector<17x8xf32>,
    %48 = vector.extract_strided_slice %29 {offsets = [0, 8], sizes = [17, 8], strides = [1, 1]} : vector<34x96xf32> to vector<17x8xf32>
    %49 = vector.extract_strided_slice %29 {offsets = [0, 40], sizes = [17, 8], strides = [1, 1]} : vector<34x96xf32> to vector<17x8xf32>
    %50 = vector.extract_strided_slice %29 {offsets = [0, 72], sizes = [17, 8], strides = [1, 1]} : vector<34x96xf32> to vector<17x8xf32>
    %cst_21 = arith.constant dense<0.000000e+00> : vector<17x17xf32>
    %51 = tpu.matmul %48, %49, %cst_21 {dimension_numbers = #tpu.dot_dimension_numbers<[1], [1], [0], [0], [0, 0, 1, 0], [], []>} : vector<17x8xf32>, vector<17x8xf32>, vector<17x17xf32> -> vector<17x17xf32>
    %cst_22 = arith.constant 0.353553385 : f32
    %52 = vector.broadcast %cst_22 : f32 to vector<17x17xf32>
    %53 = arith.mulf %51, %52 : vector<17x17xf32>
    %cst_23 = arith.constant dense<0xFF800000> : vector<17xf32>
    %54 = vector.multi_reduction <maximumf>, %53, %cst_23 [1] : vector<17x17xf32> to vector<17xf32>
    %55 = vector.shape_cast %54 : vector<17xf32> to vector<17x1xf32>
    %56 = vector.broadcast %55 : vector<17x1xf32> to vector<17x17xf32>
    %57 = arith.subf %53, %56 : vector<17x17xf32>
    %58 = math.exp %57 : vector<17x17xf32>
    %cst_24 = arith.constant dense<0.000000e+00> : vector<17xf32>
    %59 = vector.multi_reduction <add>, %58, %cst_24 [1] : vector<17x17xf32> to vector<17xf32>
    %60 = vector.shape_cast %59 : vector<17xf32> to vector<17x1xf32>
    %61 = tpu.reciprocal %60 : vector<17x1xf32> -> vector<17x1xf32>
    %62 = vector.broadcast %61 : vector<17x1xf32> to vector<17x17xf32>
    %63 = arith.mulf %58, %62 : vector<17x17xf32>
    %cst_25 = arith.constant dense<0.000000e+00> : vector<17x8xf32>
    %64 = tpu.matmul %63, %50, %cst_25 {dimension_numbers = #tpu.dot_dimension_numbers<[1], [0], [0], [1], [0, 0, 1, 1], [], []>} : vector<17x17xf32>, vector<17x8xf32>, vector<17x8xf32> -> vector<17x8xf32>
    %c0_26 = arith.constant 0 : index
    %c8 = arith.constant 8 : index
    %65 = vector.load %arg14[%c0_26, %c8] : memref<34x32xf32, #tpu.memory_space<vmem>>, vector<17x8xf32>
    tpu.vector_store %arg14[%c0_26, %c8], %64 {strides = array<i32>} : memref<34x32xf32, #tpu.memory_space<vmem>>, vector<17x8xf32>,
    %66 = vector.extract_strided_slice %29 {offsets = [0, 16], sizes = [17, 8], strides = [1, 1]} : vector<34x96xf32> to vector<17x8xf32>
    %67 = vector.extract_strided_slice %29 {offsets = [0, 48], sizes = [17, 8], strides = [1, 1]} : vector<34x96xf32> to vector<17x8xf32>
    %68 = vector.extract_strided_slice %29 {offsets = [0, 80], sizes = [17, 8], strides = [1, 1]} : vector<34x96xf32> to vector<17x8xf32>
    %cst_27 = arith.constant dense<0.000000e+00> : vector<17x17xf32>
    %69 = tpu.matmul %66, %67, %cst_27 {dimension_numbers = #tpu.dot_dimension_numbers<[1], [1], [0], [0], [0, 0, 1, 0], [], []>} : vector<17x8xf32>, vector<17x8xf32>, vector<17x17xf32> -> vector<17x17xf32>
    %cst_28 = arith.constant 0.353553385 : f32
    %70 = vector.broadcast %cst_28 : f32 to vector<17x17xf32>
    %71 = arith.mulf %69, %70 : vector<17x17xf32>
    %cst_29 = arith.constant dense<0xFF800000> : vector<17xf32>
    %72 = vector.multi_reduction <maximumf>, %71, %cst_29 [1] : vector<17x17xf32> to vector<17xf32>
    %73 = vector.shape_cast %72 : vector<17xf32> to vector<17x1xf32>
    %74 = vector.broadcast %73 : vector<17x1xf32> to vector<17x17xf32>
    %75 = arith.subf %71, %74 : vector<17x17xf32>
    %76 = math.exp %75 : vector<17x17xf32>
    %cst_30 = arith.constant dense<0.000000e+00> : vector<17xf32>
    %77 = vector.multi_reduction <add>, %76, %cst_30 [1] : vector<17x17xf32> to vector<17xf32>
    %78 = vector.shape_cast %77 : vector<17xf32> to vector<17x1xf32>
    %79 = tpu.reciprocal %78 : vector<17x1xf32> -> vector<17x1xf32>
    %80 = vector.broadcast %79 : vector<17x1xf32> to vector<17x17xf32>
    %81 = arith.mulf %76, %80 : vector<17x17xf32>
    %cst_31 = arith.constant dense<0.000000e+00> : vector<17x8xf32>
    %82 = tpu.matmul %81, %68, %cst_31 {dimension_numbers = #tpu.dot_dimension_numbers<[1], [0], [0], [1], [0, 0, 1, 1], [], []>} : vector<17x17xf32>, vector<17x8xf32>, vector<17x8xf32> -> vector<17x8xf32>
    %c0_32 = arith.constant 0 : index
    %c16 = arith.constant 16 : index
    %83 = vector.load %arg14[%c0_32, %c16] : memref<34x32xf32, #tpu.memory_space<vmem>>, vector<17x8xf32>
    tpu.vector_store %arg14[%c0_32, %c16], %82 {strides = array<i32>} : memref<34x32xf32, #tpu.memory_space<vmem>>, vector<17x8xf32>,
    %84 = vector.extract_strided_slice %29 {offsets = [0, 24], sizes = [17, 8], strides = [1, 1]} : vector<34x96xf32> to vector<17x8xf32>
    %85 = vector.extract_strided_slice %29 {offsets = [0, 56], sizes = [17, 8], strides = [1, 1]} : vector<34x96xf32> to vector<17x8xf32>
    %86 = vector.extract_strided_slice %29 {offsets = [0, 88], sizes = [17, 8], strides = [1, 1]} : vector<34x96xf32> to vector<17x8xf32>
    %cst_33 = arith.constant dense<0.000000e+00> : vector<17x17xf32>
    %87 = tpu.matmul %84, %85, %cst_33 {dimension_numbers = #tpu.dot_dimension_numbers<[1], [1], [0], [0], [0, 0, 1, 0], [], []>} : vector<17x8xf32>, vector<17x8xf32>, vector<17x17xf32> -> vector<17x17xf32>
    %cst_34 = arith.constant 0.353553385 : f32
    %88 = vector.broadcast %cst_34 : f32 to vector<17x17xf32>
    %89 = arith.mulf %87, %88 : vector<17x17xf32>
    %cst_35 = arith.constant dense<0xFF800000> : vector<17xf32>
    %90 = vector.multi_reduction <maximumf>, %89, %cst_35 [1] : vector<17x17xf32> to vector<17xf32>
    %91 = vector.shape_cast %90 : vector<17xf32> to vector<17x1xf32>
    %92 = vector.broadcast %91 : vector<17x1xf32> to vector<17x17xf32>
    %93 = arith.subf %89, %92 : vector<17x17xf32>
    %94 = math.exp %93 : vector<17x17xf32>
    %cst_36 = arith.constant dense<0.000000e+00> : vector<17xf32>
    %95 = vector.multi_reduction <add>, %94, %cst_36 [1] : vector<17x17xf32> to vector<17xf32>
    %96 = vector.shape_cast %95 : vector<17xf32> to vector<17x1xf32>
    %97 = tpu.reciprocal %96 : vector<17x1xf32> -> vector<17x1xf32>
    %98 = vector.broadcast %97 : vector<17x1xf32> to vector<17x17xf32>
    %99 = arith.mulf %94, %98 : vector<17x17xf32>
    %cst_37 = arith.constant dense<0.000000e+00> : vector<17x8xf32>
    %100 = tpu.matmul %99, %86, %cst_37 {dimension_numbers = #tpu.dot_dimension_numbers<[1], [0], [0], [1], [0, 0, 1, 1], [], []>} : vector<17x17xf32>, vector<17x8xf32>, vector<17x8xf32> -> vector<17x8xf32>
    %c0_38 = arith.constant 0 : index
    %c24 = arith.constant 24 : index
    %101 = vector.load %arg14[%c0_38, %c24] : memref<34x32xf32, #tpu.memory_space<vmem>>, vector<17x8xf32>
    tpu.vector_store %arg14[%c0_38, %c24], %100 {strides = array<i32>} : memref<34x32xf32, #tpu.memory_space<vmem>>, vector<17x8xf32>,
    %102 = vector.extract_strided_slice %29 {offsets = [17, 0], sizes = [17, 8], strides = [1, 1]} : vector<34x96xf32> to vector<17x8xf32>
    %103 = vector.extract_strided_slice %29 {offsets = [17, 32], sizes = [17, 8], strides = [1, 1]} : vector<34x96xf32> to vector<17x8xf32>
    %104 = vector.extract_strided_slice %29 {offsets = [17, 64], sizes = [17, 8], strides = [1, 1]} : vector<34x96xf32> to vector<17x8xf32>
    %cst_39 = arith.constant dense<0.000000e+00> : vector<17x17xf32>
    %105 = tpu.matmul %102, %103, %cst_39 {dimension_numbers = #tpu.dot_dimension_numbers<[1], [1], [0], [0], [0, 0, 1, 0], [], []>} : vector<17x8xf32>, vector<17x8xf32>, vector<17x17xf32> -> vector<17x17xf32>
    %cst_40 = arith.constant 0.353553385 : f32
    %106 = vector.broadcast %cst_40 : f32 to vector<17x17xf32>
    %107 = arith.mulf %105, %106 : vector<17x17xf32>
    %cst_41 = arith.constant dense<0xFF800000> : vector<17xf32>
    %108 = vector.multi_reduction <maximumf>, %107, %cst_41 [1] : vector<17x17xf32> to vector<17xf32>
    %109 = vector.shape_cast %108 : vector<17xf32> to vector<17x1xf32>
    %110 = vector.broadcast %109 : vector<17x1xf32> to vector<17x17xf32>
    %111 = arith.subf %107, %110 : vector<17x17xf32>
    %112 = math.exp %111 : vector<17x17xf32>
    %cst_42 = arith.constant dense<0.000000e+00> : vector<17xf32>
    %113 = vector.multi_reduction <add>, %112, %cst_42 [1] : vector<17x17xf32> to vector<17xf32>
    %114 = vector.shape_cast %113 : vector<17xf32> to vector<17x1xf32>
    %115 = tpu.reciprocal %114 : vector<17x1xf32> -> vector<17x1xf32>
    %116 = vector.broadcast %115 : vector<17x1xf32> to vector<17x17xf32>
    %117 = arith.mulf %112, %116 : vector<17x17xf32>
    %cst_43 = arith.constant dense<0.000000e+00> : vector<17x8xf32>
    %118 = tpu.matmul %117, %104, %cst_43 {dimension_numbers = #tpu.dot_dimension_numbers<[1], [0], [0], [1], [0, 0, 1, 1], [], []>} : vector<17x17xf32>, vector<17x8xf32>, vector<17x8xf32> -> vector<17x8xf32>
    %c17 = arith.constant 17 : index
    %c0_44 = arith.constant 0 : index
    %119 = vector.load %arg14[%c17, %c0_44] : memref<34x32xf32, #tpu.memory_space<vmem>>, vector<17x8xf32>
    tpu.vector_store %arg14[%c17, %c0_44], %118 {strides = array<i32>} : memref<34x32xf32, #tpu.memory_space<vmem>>, vector<17x8xf32>,
    %120 = vector.extract_strided_slice %29 {offsets = [17, 8], sizes = [17, 8], strides = [1, 1]} : vector<34x96xf32> to vector<17x8xf32>
    %121 = vector.extract_strided_slice %29 {offsets = [17, 40], sizes = [17, 8], strides = [1, 1]} : vector<34x96xf32> to vector<17x8xf32>
    %122 = vector.extract_strided_slice %29 {offsets = [17, 72], sizes = [17, 8], strides = [1, 1]} : vector<34x96xf32> to vector<17x8xf32>
    %cst_45 = arith.constant dense<0.000000e+00> : vector<17x17xf32>
    %123 = tpu.matmul %120, %121, %cst_45 {dimension_numbers = #tpu.dot_dimension_numbers<[1], [1], [0], [0], [0, 0, 1, 0], [], []>} : vector<17x8xf32>, vector<17x8xf32>, vector<17x17xf32> -> vector<17x17xf32>
    %cst_46 = arith.constant 0.353553385 : f32
    %124 = vector.broadcast %cst_46 : f32 to vector<17x17xf32>
    %125 = arith.mulf %123, %124 : vector<17x17xf32>
    %cst_47 = arith.constant dense<0xFF800000> : vector<17xf32>
    %126 = vector.multi_reduction <maximumf>, %125, %cst_47 [1] : vector<17x17xf32> to vector<17xf32>
    %127 = vector.shape_cast %126 : vector<17xf32> to vector<17x1xf32>
    %128 = vector.broadcast %127 : vector<17x1xf32> to vector<17x17xf32>
    %129 = arith.subf %125, %128 : vector<17x17xf32>
    %130 = math.exp %129 : vector<17x17xf32>
    %cst_48 = arith.constant dense<0.000000e+00> : vector<17xf32>
    %131 = vector.multi_reduction <add>, %130, %cst_48 [1] : vector<17x17xf32> to vector<17xf32>
    %132 = vector.shape_cast %131 : vector<17xf32> to vector<17x1xf32>
    %133 = tpu.reciprocal %132 : vector<17x1xf32> -> vector<17x1xf32>
    %134 = vector.broadcast %133 : vector<17x1xf32> to vector<17x17xf32>
    %135 = arith.mulf %130, %134 : vector<17x17xf32>
    %cst_49 = arith.constant dense<0.000000e+00> : vector<17x8xf32>
    %136 = tpu.matmul %135, %122, %cst_49 {dimension_numbers = #tpu.dot_dimension_numbers<[1], [0], [0], [1], [0, 0, 1, 1], [], []>} : vector<17x17xf32>, vector<17x8xf32>, vector<17x8xf32> -> vector<17x8xf32>
    %c17_50 = arith.constant 17 : index
    %c8_51 = arith.constant 8 : index
    %137 = vector.load %arg14[%c17_50, %c8_51] : memref<34x32xf32, #tpu.memory_space<vmem>>, vector<17x8xf32>
    tpu.vector_store %arg14[%c17_50, %c8_51], %136 {strides = array<i32>} : memref<34x32xf32, #tpu.memory_space<vmem>>, vector<17x8xf32>,
    %138 = vector.extract_strided_slice %29 {offsets = [17, 16], sizes = [17, 8], strides = [1, 1]} : vector<34x96xf32> to vector<17x8xf32>
    %139 = vector.extract_strided_slice %29 {offsets = [17, 48], sizes = [17, 8], strides = [1, 1]} : vector<34x96xf32> to vector<17x8xf32>
    %140 = vector.extract_strided_slice %29 {offsets = [17, 80], sizes = [17, 8], strides = [1, 1]} : vector<34x96xf32> to vector<17x8xf32>
    %cst_52 = arith.constant dense<0.000000e+00> : vector<17x17xf32>
    %141 = tpu.matmul %138, %139, %cst_52 {dimension_numbers = #tpu.dot_dimension_numbers<[1], [1], [0], [0], [0, 0, 1, 0], [], []>} : vector<17x8xf32>, vector<17x8xf32>, vector<17x17xf32> -> vector<17x17xf32>
    %cst_53 = arith.constant 0.353553385 : f32
    %142 = vector.broadcast %cst_53 : f32 to vector<17x17xf32>
    %143 = arith.mulf %141, %142 : vector<17x17xf32>
    %cst_54 = arith.constant dense<0xFF800000> : vector<17xf32>
    %144 = vector.multi_reduction <maximumf>, %143, %cst_54 [1] : vector<17x17xf32> to vector<17xf32>
    %145 = vector.shape_cast %144 : vector<17xf32> to vector<17x1xf32>
    %146 = vector.broadcast %145 : vector<17x1xf32> to vector<17x17xf32>
    %147 = arith.subf %143, %146 : vector<17x17xf32>
    %148 = math.exp %147 : vector<17x17xf32>
    %cst_55 = arith.constant dense<0.000000e+00> : vector<17xf32>
    %149 = vector.multi_reduction <add>, %148, %cst_55 [1] : vector<17x17xf32> to vector<17xf32>
    %150 = vector.shape_cast %149 : vector<17xf32> to vector<17x1xf32>
    %151 = tpu.reciprocal %150 : vector<17x1xf32> -> vector<17x1xf32>
    %152 = vector.broadcast %151 : vector<17x1xf32> to vector<17x17xf32>
    %153 = arith.mulf %148, %152 : vector<17x17xf32>
    %cst_56 = arith.constant dense<0.000000e+00> : vector<17x8xf32>
    %154 = tpu.matmul %153, %140, %cst_56 {dimension_numbers = #tpu.dot_dimension_numbers<[1], [0], [0], [1], [0, 0, 1, 1], [], []>} : vector<17x17xf32>, vector<17x8xf32>, vector<17x8xf32> -> vector<17x8xf32>
    %c17_57 = arith.constant 17 : index
    %c16_58 = arith.constant 16 : index
    %155 = vector.load %arg14[%c17_57, %c16_58] : memref<34x32xf32, #tpu.memory_space<vmem>>, vector<17x8xf32>
    tpu.vector_store %arg14[%c17_57, %c16_58], %154 {strides = array<i32>} : memref<34x32xf32, #tpu.memory_space<vmem>>, vector<17x8xf32>,
    %156 = vector.extract_strided_slice %29 {offsets = [17, 24], sizes = [17, 8], strides = [1, 1]} : vector<34x96xf32> to vector<17x8xf32>
    %157 = vector.extract_strided_slice %29 {offsets = [17, 56], sizes = [17, 8], strides = [1, 1]} : vector<34x96xf32> to vector<17x8xf32>
    %158 = vector.extract_strided_slice %29 {offsets = [17, 88], sizes = [17, 8], strides = [1, 1]} : vector<34x96xf32> to vector<17x8xf32>
    %cst_59 = arith.constant dense<0.000000e+00> : vector<17x17xf32>
    %159 = tpu.matmul %156, %157, %cst_59 {dimension_numbers = #tpu.dot_dimension_numbers<[1], [1], [0], [0], [0, 0, 1, 0], [], []>} : vector<17x8xf32>, vector<17x8xf32>, vector<17x17xf32> -> vector<17x17xf32>
    %cst_60 = arith.constant 0.353553385 : f32
    %160 = vector.broadcast %cst_60 : f32 to vector<17x17xf32>
    %161 = arith.mulf %159, %160 : vector<17x17xf32>
    %cst_61 = arith.constant dense<0xFF800000> : vector<17xf32>
    %162 = vector.multi_reduction <maximumf>, %161, %cst_61 [1] : vector<17x17xf32> to vector<17xf32>
    %163 = vector.shape_cast %162 : vector<17xf32> to vector<17x1xf32>
    %164 = vector.broadcast %163 : vector<17x1xf32> to vector<17x17xf32>
    %165 = arith.subf %161, %164 : vector<17x17xf32>
    %166 = math.exp %165 : vector<17x17xf32>
    %cst_62 = arith.constant dense<0.000000e+00> : vector<17xf32>
    %167 = vector.multi_reduction <add>, %166, %cst_62 [1] : vector<17x17xf32> to vector<17xf32>
    %168 = vector.shape_cast %167 : vector<17xf32> to vector<17x1xf32>
    %169 = tpu.reciprocal %168 : vector<17x1xf32> -> vector<17x1xf32>
    %170 = vector.broadcast %169 : vector<17x1xf32> to vector<17x17xf32>
    %171 = arith.mulf %166, %170 : vector<17x17xf32>
    %cst_63 = arith.constant dense<0.000000e+00> : vector<17x8xf32>
    %172 = tpu.matmul %171, %158, %cst_63 {dimension_numbers = #tpu.dot_dimension_numbers<[1], [0], [0], [1], [0, 0, 1, 1], [], []>} : vector<17x17xf32>, vector<17x8xf32>, vector<17x8xf32> -> vector<17x8xf32>
    %c17_64 = arith.constant 17 : index
    %c24_65 = arith.constant 24 : index
    %173 = vector.load %arg14[%c17_64, %c24_65] : memref<34x32xf32, #tpu.memory_space<vmem>>, vector<17x8xf32>
    tpu.vector_store %arg14[%c17_64, %c24_65], %172 {strides = array<i32>} : memref<34x32xf32, #tpu.memory_space<vmem>>, vector<17x8xf32>,
    %c0_66 = arith.constant 0 : index
    %c0_67 = arith.constant 0 : index
    %174 = vector.load %arg14[%c0_66, %c0_67] : memref<34x32xf32, #tpu.memory_space<vmem>>, vector<34x32xf32>
    %c0_68 = arith.constant 0 : index
    %c0_69 = arith.constant 0 : index
    %175 = vector.load %arg5[%c0_68, %c0_69] : memref<32x32xf32, #tpu.memory_space<vmem>>, vector<32x32xf32>
    %cst_70 = arith.constant dense<0.000000e+00> : vector<34x32xf32>
    %176 = tpu.matmul %174, %175, %cst_70 {dimension_numbers = #tpu.dot_dimension_numbers<[1], [0], [0], [1], [0, 0, 1, 1], [], []>} : vector<34x32xf32>, vector<32x32xf32>, vector<34x32xf32> -> vector<34x32xf32>
    %c0_71 = arith.constant 0 : index
    %c0_72 = arith.constant 0 : index
    %177 = vector.load %arg6[%c0_71, %c0_72] : memref<1x32xf32, #tpu.memory_space<vmem>>, vector<1x32xf32>
    %178 = vector.broadcast %177 : vector<1x32xf32> to vector<34x32xf32>
    %179 = arith.addf %176, %178 : vector<34x32xf32>
    %180 = arith.addf %0, %179 : vector<34x32xf32>
    %c0_73 = arith.constant 0 : index
    %c0_74 = arith.constant 0 : index
    %181 = vector.load %arg7[%c0_73, %c0_74] : memref<1x32xf32, #tpu.memory_space<vmem>>, vector<1x32xf32>
    %c0_75 = arith.constant 0 : index
    %c0_76 = arith.constant 0 : index
    %182 = vector.load %arg8[%c0_75, %c0_76] : memref<1x32xf32, #tpu.memory_space<vmem>>, vector<1x32xf32>
    %cst_77 = arith.constant dense<0.000000e+00> : vector<34xf32>
    %183 = vector.multi_reduction <add>, %180, %cst_77 [1] : vector<34x32xf32> to vector<34xf32>
    %184 = vector.shape_cast %183 : vector<34xf32> to vector<34x1xf32>
    %cst_78 = arith.constant 3.200000e+01 : f32
    %185 = vector.broadcast %cst_78 : f32 to vector<34x1xf32>
    %186 = arith.divf %184, %185 : vector<34x1xf32>
    %187 = vector.broadcast %186 : vector<34x1xf32> to vector<34x32xf32>
    %188 = arith.subf %180, %187 : vector<34x32xf32>
    %189 = arith.mulf %188, %188 : vector<34x32xf32>
    %cst_79 = arith.constant dense<0.000000e+00> : vector<34xf32>
    %190 = vector.multi_reduction <add>, %189, %cst_79 [1] : vector<34x32xf32> to vector<34xf32>
    %191 = vector.shape_cast %190 : vector<34xf32> to vector<34x1xf32>
    %cst_80 = arith.constant 3.200000e+01 : f32
    %192 = vector.broadcast %cst_80 : f32 to vector<34x1xf32>
    %193 = arith.divf %191, %192 : vector<34x1xf32>
    %194 = vector.broadcast %186 : vector<34x1xf32> to vector<34x32xf32>
    %195 = arith.subf %180, %194 : vector<34x32xf32>
    %cst_81 = arith.constant 9.99999997E-7 : f32
    %196 = vector.broadcast %cst_81 : f32 to vector<34x1xf32>
    %197 = arith.addf %193, %196 : vector<34x1xf32>
    %198 = math.rsqrt %197 : vector<34x1xf32>
    %199 = vector.broadcast %198 : vector<34x1xf32> to vector<34x32xf32>
    %200 = arith.mulf %195, %199 : vector<34x32xf32>
    %201 = vector.broadcast %181 : vector<1x32xf32> to vector<34x32xf32>
    %202 = arith.mulf %200, %201 : vector<34x32xf32>
    %203 = vector.broadcast %182 : vector<1x32xf32> to vector<34x32xf32>
    %204 = arith.addf %202, %203 : vector<34x32xf32>
    %c0_82 = arith.constant 0 : index
    %c0_83 = arith.constant 0 : index
    %205 = vector.load %arg9[%c0_82, %c0_83] : memref<32x128xf32, #tpu.memory_space<vmem>>, vector<32x128xf32>
    %cst_84 = arith.constant dense<0.000000e+00> : vector<34x128xf32>
    %206 = tpu.matmul %204, %205, %cst_84 {dimension_numbers = #tpu.dot_dimension_numbers<[1], [0], [0], [1], [0, 0, 1, 1], [], []>} : vector<34x32xf32>, vector<32x128xf32>, vector<34x128xf32> -> vector<34x128xf32>
    %c0_85 = arith.constant 0 : index
    %c0_86 = arith.constant 0 : index
    %207 = vector.load %arg10[%c0_85, %c0_86] : memref<1x128xf32, #tpu.memory_space<vmem>>, vector<1x128xf32>
    %208 = vector.broadcast %207 : vector<1x128xf32> to vector<34x128xf32>
    %209 = arith.addf %206, %208 : vector<34x128xf32>
    %cst_87 = arith.constant 5.000000e-01 : f32
    %210 = vector.broadcast %cst_87 : f32 to vector<34x128xf32>
    %211 = arith.mulf %210, %209 : vector<34x128xf32>
    %cst_88 = arith.constant 0.707106769 : f32
    %212 = vector.broadcast %cst_88 : f32 to vector<34x128xf32>
    %213 = arith.mulf %209, %212 : vector<34x128xf32>
    %214 = math.absf %213 : vector<34x128xf32>
    %cst_89 = arith.constant 0.327591091 : f32
    %215 = vector.broadcast %cst_89 : f32 to vector<34x128xf32>
    %216 = arith.mulf %215, %214 : vector<34x128xf32>
    %cst_90 = arith.constant 1.000000e+00 : f32
    %217 = vector.broadcast %cst_90 : f32 to vector<34x128xf32>
    %218 = arith.addf %217, %216 : vector<34x128xf32>
    %cst_91 = arith.constant 1.000000e+00 : f32
    %219 = vector.broadcast %cst_91 : f32 to vector<34x128xf32>
    %220 = arith.divf %219, %218 : vector<34x128xf32>
    %cst_92 = arith.constant 1.06140542 : f32
    %221 = vector.broadcast %cst_92 : f32 to vector<34x128xf32>
    %222 = arith.mulf %221, %220 : vector<34x128xf32>
    %cst_93 = arith.constant -1.45315206 : f32
    %223 = vector.broadcast %cst_93 : f32 to vector<34x128xf32>
    %224 = arith.addf %222, %223 : vector<34x128xf32>
    %225 = arith.mulf %224, %220 : vector<34x128xf32>
    %cst_94 = arith.constant 1.42141378 : f32
    %226 = vector.broadcast %cst_94 : f32 to vector<34x128xf32>
    %227 = arith.addf %225, %226 : vector<34x128xf32>
    %228 = arith.mulf %227, %220 : vector<34x128xf32>
    %cst_95 = arith.constant -0.284496725 : f32
    %229 = vector.broadcast %cst_95 : f32 to vector<34x128xf32>
    %230 = arith.addf %228, %229 : vector<34x128xf32>
    %231 = arith.mulf %230, %220 : vector<34x128xf32>
    %cst_96 = arith.constant 0.254829586 : f32
    %232 = vector.broadcast %cst_96 : f32 to vector<34x128xf32>
    %233 = arith.addf %231, %232 : vector<34x128xf32>
    %234 = arith.mulf %233, %220 : vector<34x128xf32>
    %cst_97 = arith.constant 0.000000e+00 : f32
    %235 = vector.broadcast %cst_97 : f32 to vector<34x128xf32>
    %236 = arith.subf %235, %214 : vector<34x128xf32>
    %237 = arith.mulf %236, %214 : vector<34x128xf32>
    %238 = math.exp %237 : vector<34x128xf32>
    %239 = arith.mulf %234, %238 : vector<34x128xf32>
    %cst_98 = arith.constant 1.000000e+00 : f32
    %240 = vector.broadcast %cst_98 : f32 to vector<34x128xf32>
    %241 = arith.subf %240, %239 : vector<34x128xf32>
    %cst_99 = arith.constant 0.000000e+00 : f32
    %242 = vector.broadcast %cst_99 : f32 to vector<34x128xf32>
    %243 = arith.cmpf oge, %213, %242 : vector<34x128xf32>
    %cst_100 = arith.constant 0.000000e+00 : f32
    %244 = vector.broadcast %cst_100 : f32 to vector<34x128xf32>
    %245 = arith.subf %244, %241 : vector<34x128xf32>
    %246 = arith.select %243, %241, %245 : vector<34x128xi1>, vector<34x128xf32>
    %cst_101 = arith.constant 1.000000e+00 : f32
    %247 = vector.broadcast %cst_101 : f32 to vector<34x128xf32>
    %248 = arith.addf %247, %246 : vector<34x128xf32>
    %249 = arith.mulf %211, %248 : vector<34x128xf32>
    %c0_102 = arith.constant 0 : index
    %c0_103 = arith.constant 0 : index
    %250 = vector.load %arg11[%c0_102, %c0_103] : memref<128x32xf32, #tpu.memory_space<vmem>>, vector<128x32xf32>
    %cst_104 = arith.constant dense<0.000000e+00> : vector<34x32xf32>
    %251 = tpu.matmul %249, %250, %cst_104 {dimension_numbers = #tpu.dot_dimension_numbers<[1], [0], [0], [1], [0, 0, 1, 1], [], []>} : vector<34x128xf32>, vector<128x32xf32>, vector<34x32xf32> -> vector<34x32xf32>
    %c0_105 = arith.constant 0 : index
    %c0_106 = arith.constant 0 : index
    %252 = vector.load %arg12[%c0_105, %c0_106] : memref<1x32xf32, #tpu.memory_space<vmem>>, vector<1x32xf32>
    %253 = vector.broadcast %252 : vector<1x32xf32> to vector<34x32xf32>
    %254 = arith.addf %251, %253 : vector<34x32xf32>
    %255 = arith.addf %180, %254 : vector<34x32xf32>
    %c0_107 = arith.constant 0 : index
    %c0_108 = arith.constant 0 : index
    %256 = vector.load %arg13[%c0_107, %c0_108] : memref<34x32xf32, #tpu.memory_space<vmem>>, vector<34x32xf32>
    tpu.vector_store %arg13[%c0_107, %c0_108], %255 {strides = array<i32>} : memref<34x32xf32, #tpu.memory_space<vmem>>, vector<34x32xf32>,
    return
  }
}

</mosaic_0001>

<bundles_post_ra>
// kernel: vit_forward.2
= control target key start
LH: loop header
LB: loop body
LE: loop exit
PB: predicated region body
PF: predicated region fallthrough
CT: control target
= control target key end

     0   :  { %vm51_vm0 = vcmask 261120   ;;  %v3807_v21 = vmov 0.0|0.0   ;;  %vm3808_vm1 = vmmov 0   ;;  %v3809_v25 = vmov 0.0   ;;  %s3810_s25 = smov 96   ;;  %s3811_s29 = smov 64   ;;  %s4877_s0 = inlined_call_operand.vmem [shape: f32[34,32], index: 0, kind: input, shape index: {}]   ;;  %s4878_s3 = inlined_call_operand.vmem [shape: f32[32,96], index: 3, kind: input, shape index: {}]   ;;  %s4879_s1 = inlined_call_operand.vmem [shape: f32[1,32], index: 1, kind: input, shape index: {}]   ;;  %s4880_s2 = inlined_call_operand.vmem [shape: f32[1,32], index: 2, kind: input, shape index: {}]   ;;  %s4881_s4 = inlined_call_operand.vmem [shape: f32[1,96], index: 4, kind: input, shape index: {}]   ;;  %s4882_s5 = inlined_call_operand.vmem [shape: f32[32,32], index: 5, kind: input, shape index: {}]   ;;  %s4883_s6 = inlined_call_operand.vmem [shape: f32[1,32], index: 6, kind: input, shape index: {}]   ;;  %s4884_s9 = inlined_call_operand.vmem [shape: f32[32,128], index: 9, kind: input, shape index: {}]   ;;  %s4885_s7 = inlined_call_operand.vmem [shape: f32[1,32], index: 7, kind: input, shape index: {}]   ;;  %s4886_s8 = inlined_call_operand.vmem [shape: f32[1,32], index: 8, kind: input, shape index: {}]   ;;  %s4887_s11 = inlined_call_operand.vmem [shape: f32[128,32], index: 11, kind: input, shape index: {}]   ;;  %s4888_s10 = inlined_call_operand.vmem [shape: f32[1,128], index: 10, kind: input, shape index: {}]   ;;  %s4889_s12 = inlined_call_operand.vmem [shape: f32[1,32], index: 12, kind: input, shape index: {}]   ;;  %s4890_s13 = inlined_call_operand.vmem [shape: f32[34,32], index: 13, kind: output, shape index: {}]  }
   0x1   :  { %v44_v0 = vld [vmem:[%s4877_s0] sm:$0xff]  ;;  %v46_v1 = vld [vmem:[%s4877_s0 + $0x10] sm:$0xff]  ;;  %v45_v2 = vld [vmem:[%s4877_s0 + $0x8] sm:$0xff]  ;;  %3471 = vmatprep.subr.bf16.mxu0 %v3807_v21  ;;  %3123 = vmatprep.mubr.msk.f32.mxu0 %vm3808_vm1, %v3809_v25  ;;  %vm64_vm2 = vcmask 254976   ;;  %vm266_vm3 = vcmask 64512   ;;  %vm362_vm5 = vcmask 138240  }
   0x2   :  { %v52_v3 = vsel %vm51_vm0, %v44_v0, 0.0  ;;  %v58_v4 = vsel %vm51_vm0, %v46_v1, 0.0  ;;  %v55_v5 = vsel %vm51_vm0, %v45_v2, 0.0  ;;  %v141_v22 = vld [vmem:[%s4878_s3] sm:$0xff]  ;;  %v142_v23 = vld [vmem:[%s4878_s3 + $0x8] sm:$0xff]  ;;  %v143_v24 = vld [vmem:[%s4878_s3 + $0x10] sm:$0xff]  ;;  %3477 = vmatprep.subr.bf16.mxu1 %v3807_v21  ;;  %3144 = vmatprep.mubr.msk.f32.mxu1 %vm3808_vm1, %v3809_v25 }
   0x3   :  { %53 = vadd.xlane.f32.xlu0 %v52_v3  ;;  %59 = vadd.xlane.f32.xlu1 %v58_v4  ;;  %v3472_v26 = vpack.c.bf16 %v142_v23, %v141_v22  ;;  %v144_v27 = vld [vmem:[%s4878_s3 + $0x18] sm:$0xff]  ;;  %v3932_v39 = vld [vmem:[%s4879_s1] ss:$0 sm:$0xff]  ;;  %vm3986_vm4 = vmpackc.low %vm266_vm3, %vm266_vm3  ;;  %vm369_vm6 = vcmask 131072   ;;  %s3812_s30 = smov 88   ;;  %s3813_s14 = smov 80  }
   0x4   :  { %v3475_v28 = vpack.c.bf16 %v144_v27, %v143_v24  ;;  %v3937_v41 = vld [vmem:[%s4880_s2] ss:$0 sm:$0xff]  ;;  %s3814_s15 = smov 120   ;;  %s3815_s16 = smov 112   ;;  %vm1271_vm7 = vcmask 1046528   ;;  %vm414_vm8 = vcmask 1040384  }
   0x5   :  { %3473 = vmatpush3.bf16.msra.mxu0 %v3472_v26  ;;  %v3957_v54 = vld [vmem:[%s4881_s4] ss:$0 sm:$0xff]  ;;  %s3816_s17 = smov 104   ;;  %s3817_s18 = smov 72   ;;  %vm499_vm9 = vcmask 57344   ;;  %vm752_vm10 = vcmask 130112  }
   0x6   :  { %3474 = vmatprep.subr.bf16.mxu0 %v3807_v21  ;;  %v48_v63 = vld [vmem:[%s4877_s0 + $0x20] sm:$0x3]  ;;  %s3818_s19 = smov 56   ;;  %s3819_s20 = smov 48   ;;  %vm755_vm11 = vcmask 122944   ;;  %vm1008_vm12 = vcmask 195712  }
   0x7   :  { %56 = vadd.xlane.f32.xlu0 %v55_v5  ;;  %s3820_s21 = smov 40   ;;  %s3821_s3 = smov 8   ;;  %vm1011_vm13 = vcmask 188544   ;;  %vm1264_vm14 = vcmask 261312   ;;  %vm1267_vm15 = vcmask 254144  }
   0x8   :  { %s3822_s2 = smov 16   ;;  %s3823_s28 = smov 24  }
   0x9   :  { %3476 = vmatpush3.bf16.msra.mxu0 %v3475_v28 }
   0xa   :  { %3491 = vmatprep.subr.bf16.mxu0 %v3807_v21 }
  0x90   :  { %v54_v6 = vpop.xlane.xlu0 %53  ;;  %v60_v7 = vpop.xlane.xlu1 %59 }
  0x91   :  { %v69_v8 = vmul.f32 0.03125, %v54_v6  ;;  %v71_v9 = vmul.f32 0.03125, %v60_v7 }
  0x93   :  { %v74_v10 = vsub.f32 %v44_v0, %v69_v8  ;;  %v76_v11 = vsub.f32 %v46_v1, %v71_v9  ;;  %v65_v0 = vsel %vm64_vm2, %v48_v63, 0.0  ;;  %v47_v1 = vld [vmem:[%s4877_s0 + $0x18] sm:$0xff] }
  0x94   :  { %v57_v12 = vpop.xlane.xlu0 %56 }
  0x95   :  { %v70_v13 = vmul.f32 0.03125, %v57_v12  ;;  %v79_v14 = vmul.f32 %v74_v10, %v74_v10  ;;  %v81_v15 = vmul.f32 %v76_v11, %v76_v11 }
  0x97   :  { %v75_v16 = vsub.f32 %v45_v2, %v70_v13  ;;  %v84_v17 = vsel %vm51_vm0, %v79_v14, 0.0  ;;  %v90_v18 = vsel %vm51_vm0, %v81_v15, 0.0  ;;  %v61_v2 = vsel %vm51_vm0, %v47_v1, 0.0 }
  0x98   :  { %85 = vadd.xlane.f32.xlu1 %v84_v17 }
  0x99   :  { %v80_v19 = vmul.f32 %v75_v16, %v75_v16 }
  0x9b   :  { %v87_v20 = vsel %vm51_vm0, %v80_v19, 0.0 }
  0x9c   :  { %91 = vadd.xlane.f32.xlu1 %v90_v18  ;;  %88 = vadd.xlane.f32.xlu0 %v87_v20 }
 0x125   :  { %v86_v29 = vpop.xlane.xlu1 %85 }
 0x126   :  { %v99_v30 = vmul.f32 0.03125, %v86_v29 }
 0x128   :  { %v104_v31 = vadd.f32 1e-06, %v99_v30 }
 0x129   :  { %v92_v32 = vpop.xlane.xlu1 %91  ;;  %v89_v33 = vpop.xlane.xlu0 %88 }
 0x12a   :  { %3666 = vrsqrt.f32 %v104_v31  ;;  %v101_v34 = vmul.f32 0.03125, %v92_v32  ;;  %v100_v35 = vmul.f32 0.03125, %v89_v33 }
 0x12c   :  { %v106_v36 = vadd.f32 1e-06, %v101_v34  ;;  %v105_v37 = vadd.f32 1e-06, %v100_v35 }
 0x12e   :  { %3668 = vrsqrt.f32 %v106_v36 }
 0x12f   :  { %3670 = vrsqrt.f32 %v105_v37 }
 0x134   :  { %v3667_v38 = vpop.eup %3666 }
 0x135   :  { %v114_v40 = vmul.f32 %v3667_v38, %v74_v10 }
 0x137   :  { %v125_v42 = vmul.f32 %v3932_v39, %v114_v40 }
 0x138   :  { %v3669_v43 = vpop.eup %3668 }
 0x139   :  { %v3671_v44 = vpop.eup %3670  ;;  %v136_v45 = vadd.f32 %v3937_v41, %v125_v42  ;;  %v116_v47 = vmul.f32 %v3669_v43, %v76_v11 }
 0x13a   :  { %v115_v46 = vmul.f32 %v3671_v44, %v75_v16 }
 0x13b   :  { %3124 = vmatmul.mubr.msk.f32.vlgmr.msra.gmra.mrb[0].mxu0 %vm51_vm0, %v136_v45  ;;  %v127_v50 = vmul.f32 %v3932_v39, %v116_v47 }
 0x13c   :  { %3126 = vmatprep.mubr.msk.f32.mxu0 %vm3808_vm1, %v3809_v25  ;;  %v126_v48 = vmul.f32 %v3932_v39, %v115_v46 }
 0x13d   :  { %v138_v51 = vadd.f32 %v3937_v41, %v127_v50 }
 0x13e   :  { %v137_v49 = vadd.f32 %v3937_v41, %v126_v48 }
 0x140   :  { %3127 = vmatmul.mubr.msk.f32.gmra.mrb[2].mxu0 %vm51_vm0, %v137_v49 }
 0x141   :  { %3129 = vmatprep.mubr.msk.f32.mxu0 %vm3808_vm1, %v3809_v25 }
 0x144   :  { %3130 = vmatmul.mubr.msk.f32.gmra.mrb[4].mxu0 %vm51_vm0, %v138_v51 }
 0x145   :  { %3132 = vmatprep.mubr.msk.f32.mxu0 %vm3808_vm1, %v3809_v25 }
 0x20e   :  { %v233_v52 = vpop.f32.mrb[0].mxu0 }
 0x20f   :  { %v3125_v53 = vpop.f32.mrb[1].mxu0  ;;  %v3960_v56 = vadd.f32 %v3957_v54, %v233_v52 }
 0x213   :  { %v238_v55 = vpop.f32.mrb[2].mxu0 }
 0x214   :  { %v3963_v57 = vadd.f32 %v3957_v54, %v238_v55  ;;  %v3128_v58 = vpop.f32.mrb[3].mxu0 }
 0x216   :  { %v3967_v59 = vpack.i.bf16 %v3963_v57, %v3960_v56 }
 0x217   :  { %v243_v60 = vpop.f32.mrb[4].mxu0 }
 0x218   :  { %v3970_v61 = vadd.f32 %v3957_v54, %v243_v60  ;;  %3587 = vrot.lane.b32.xlu0 %v3967_v59, %s3810_s25  ;;  %v3131_v62 = vpop.f32.mrb[5].mxu0 }
 0x21a   :  { %264 = vrot.lane.b32.xlu1 %v3970_v61, %s3810_s25 }
 0x237   :  { %66 = vadd.xlane.f32.xlu0 %v65_v0 }
 0x23e   :  { %62 = vadd.xlane.f32.xlu1 %v61_v2 }
 0x28a   :  { %v3588_v3 = vpop.permute.xlu0 %3587 }
 0x28b   :  { %v3590_v4 = vunpack.i.h.bf16 %v3588_v3  ;;  %v3589_v5 = vunpack.i.l.bf16 %v3588_v3 }
 0x28c   :  { %v265_v8 = vpop.permute.xlu1 %264 }
 0x28d   :  { %v3478_v7 = vpack.c.bf16 %v3590_v4, %v3589_v5 }
 0x28f   :  { %3480 = vmatpush3.bf16.xpose.msk.msra.mxu1 %vm3986_vm4, %v3478_v7 }
 0x290   :  { %3142 = vmatprep.subr.mxu1 %v3809_v25 }
 0x297   :  { %3143 = vmatpush3.xpose.msk.msra.mxu1 %vm266_vm3, %v265_v8 }
 0x298   :  { %3481 = vmatprep.subr.bf16.mxu1 %v3807_v21 }
 0x29a   :  { %3145 = vmatmul.mubr.msk.f32.vlgmr.msra.gmra.mrb[0].mxu1 %vm266_vm3, %v3960_v56 }
 0x29b   :  { %3147 = vmatprep.mubr.msk.f32.mxu1 %vm3808_vm1, %v3809_v25 }
 0x29e   :  { %3148 = vmatmul.mubr.msk.f32.gmra.mrb[2].mxu1 %vm266_vm3, %v3963_v57 }
 0x29f   :  { %3150 = vmatprep.mubr.msk.f32.mxu1 %vm3808_vm1, %v3809_v25 }
 0x2a2   :  { %3151 = vmatmul.mubr.msk.f32.gmra.mrb[4].mxu1 %vm266_vm3, %v3970_v61 }
 0x2a3   :  { %3159 = vmatprep.mubr.msk.f32.mxu1 %vm3808_vm1, %v3809_v25 }
 0x2c4   :  { %v67_v9 = vpop.xlane.xlu0 %66 }
 0x2c5   :  { %v73_v10 = vmul.f32 0.03125, %v67_v9 }
 0x2c7   :  { %v78_v11 = vsub.f32 %v48_v63, %v73_v10 }
 0x2c9   :  { %v83_v12 = vmul.f32 %v78_v11, %v78_v11 }
 0x2cb   :  { %v63_v13 = vpop.xlane.xlu1 %62  ;;  %v96_v14 = vsel %vm64_vm2, %v83_v12, 0.0 }
 0x2cc   :  { %v72_v15 = vmul.f32 0.03125, %v63_v13  ;;  %97 = vadd.xlane.f32.xlu1 %v96_v14 }
 0x2ce   :  { %v77_v16 = vsub.f32 %v47_v1, %v72_v15 }
 0x2d0   :  { %v82_v17 = vmul.f32 %v77_v16, %v77_v16 }
 0x2d2   :  { %v93_v18 = vsel %vm51_vm0, %v82_v17, 0.0 }
 0x2d3   :  { %94 = vadd.xlane.f32.xlu0 %v93_v18 }
 0x359   :  { %v98_v19 = vpop.xlane.xlu1 %97 }
 0x35a   :  { %v103_v20 = vmul.f32 0.03125, %v98_v19 }
 0x35c   :  { %v108_v22 = vadd.f32 1e-06, %v103_v20 }
 0x35e   :  { %3672 = vrsqrt.f32 %v108_v22 }
 0x360   :  { %v95_v23 = vpop.xlane.xlu0 %94 }
 0x361   :  { %v102_v24 = vmul.f32 0.03125, %v95_v23 }
 0x363   :  { %v107_v26 = vadd.f32 1e-06, %v102_v24 }
 0x365   :  { %3674 = vrsqrt.f32 %v107_v26 }
 0x368   :  { %v3673_v27 = vpop.eup %3672 }
 0x369   :  { %v118_v34 = vmul.f32 %v3673_v27, %v78_v11  ;;  %v1272_v11 = vrot.slane %v3970_v61, 1 }
 0x36b   :  { %v129_v43 = vmul.f32 %v3932_v39, %v118_v34 }
 0x36d   :  { %v345_v28 = vpop.f32.mrb[0].mxu1  ;;  %v140_v48 = vadd.f32 %v3937_v41, %v129_v43 }
 0x36e   :  { %v359_v29 = vmul.f32 0.35355338, %v345_v28  ;;  %v3146_v30 = vpop.f32.mrb[1].mxu1 }
 0x36f   :  { %v3675_v31 = vpop.eup %3674 }
 0x370   :  { %v363_v32 = vsel %vm362_vm5, %v359_v29, -inf  ;;  %v117_v33 = vmul.f32 %v3675_v31, %v77_v16 }
 0x371   :  { %v350_v35 = vpop.f32.mrb[2].mxu1  ;;  %364 = vmax.xlane.f32.xlu0 %v363_v32 }
 0x372   :  { %v360_v36 = vmul.f32 0.35355338, %v350_v35  ;;  %v3149_v37 = vpop.f32.mrb[3].mxu1  ;;  %v128_v38 = vmul.f32 %v3932_v39, %v117_v33 }
 0x374   :  { %v366_v40 = vsel %vm362_vm5, %v360_v36, -inf  ;;  %v139_v42 = vadd.f32 %v3937_v41, %v128_v38 }
 0x375   :  { %367 = vmax.xlane.f32.xlu1 %v366_v40  ;;  %v355_v44 = vpop.f32.mrb[4].mxu1 }
 0x376   :  { %v361_v45 = vmul.f32 0.35355338, %v355_v44  ;;  %3133 = vmatmul.mubr.msk.f32.gmra.mrb[6].mxu0 %vm51_vm0, %v139_v42  ;;  %v3152_v46 = vpop.f32.mrb[5].mxu1 }
 0x377   :  { %3135 = vmatprep.mubr.msk.f32.mxu0 %vm3808_vm1, %v3809_v25 }
 0x378   :  { %v370_v47 = vsel %vm369_vm6, %v361_v45, -inf }
 0x379   :  { %371 = vmax.xlane.f32.xlu0 %v370_v47 }
 0x37a   :  { %3136 = vmatmul.mubr.msk.f32.gmra.mrb[8].mxu0 %vm51_vm0, %v140_v48 }
 0x37b   :  { %3204 = vmatprep.mubr.msk.f32.mxu0 %vm3808_vm1, %v3809_v25 }
 0x3fe   :  { %v365_v39 = vpop.xlane.xlu0 %364 }
 0x3ff   :  { %v373_v49 = vsub.f32 %v359_v29, %v365_v39 }
 0x401   :  { %v376_v50 = vmul.f32 1.442695, %v373_v49 }
 0x402   :  { %v368_v51 = vpop.xlane.xlu1 %367 }
 0x403   :  { %3676 = vpow2.f32 %v376_v50  ;;  %v374_v52 = vsub.f32 %v360_v36, %v368_v51 }
 0x405   :  { %v378_v53 = vmul.f32 1.442695, %v374_v52 }
 0x406   :  { %v372_v62 = vpop.xlane.xlu0 %371 }
 0x407   :  { %3678 = vpow2.f32 %v378_v53  ;;  %v375_v63 = vsub.f32 %v361_v45, %v372_v62 }
 0x409   :  { %v380_v0 = vmul.f32 1.442695, %v375_v63 }
 0x40b   :  { %3680 = vpow2.f32 %v380_v0 }
 0x40d   :  { %v4022_v55 = vpop.eup %3676 }
 0x40e   :  { %v382_v58 = vsel %vm362_vm5, %v4022_v55, 0.0 }
 0x40f   :  { %383 = vadd.xlane.f32.xlu1 %v382_v58 }
 0x411   :  { %v4026_v41 = vpop.eup %3678 }
 0x412   :  { %v385_v60 = vsel %vm362_vm5, %v4026_v41, 0.0 }
 0x413   :  { %386 = vadd.xlane.f32.xlu0 %v385_v60 }
 0x415   :  { %v4048_v1 = vpop.eup %3680 }
 0x416   :  { %v388_v5 = vsel %vm369_vm6, %v4048_v1, 0.0 }
 0x420   :  { %401 = vrot.lane.b32.xlu1 %v3970_v61, %s3811_s29 }
 0x424   :  { %3597 = vrot.lane.b32.xlu1 %v3967_v59, %s3812_s30 }
 0x428   :  { %511 = vrot.lane.b32.xlu1 %v3970_v61, %s3812_s30 }
 0x429   :  { %3592 = vrot.lane.b32.xlu0 %v3967_v59, %s3811_s29 }
 0x42d   :  { %3602 = vrot.lane.b32.xlu0 %v3967_v59, %s3813_s14 }
 0x431   :  { %503 = vrot.lane.b32.xlu0 %v3963_v57, %s3814_s15 }
 0x435   :  { %767 = vrot.lane.b32.xlu0 %v3970_v61, %s3813_s14 }
 0x439   :  { %757 = vrot.lane.b32.xlu0 %v3960_v56, %s3815_s16 }
 0x43d   :  { %761 = vrot.lane.b32.xlu0 %v3970_v61, %s3815_s16 }
 0x449   :  { %v248_v2 = vpop.f32.mrb[6].mxu0 }
 0x44a   :  { %v249_v3 = vadd.f32 %v3957_v54, %v248_v2  ;;  %v3134_v4 = vpop.f32.mrb[7].mxu0 }
 0x44c   :  { %389 = vadd.xlane.f32.xlu1 %v388_v5  ;;  %v1273_v8 = vrot.slane %v249_v3, 1 }
 0x44d   :  { %v253_v7 = vpop.f32.mrb[8].mxu0 }
 0x44e   :  { %v254_v9 = vadd.f32 %v3957_v54, %v253_v7  ;;  %v3137_v10 = vpop.f32.mrb[9].mxu0  ;;  %v4057_v13 = vsel %vm1271_vm7, %v1272_v11, %v1273_v8 }
 0x450   :  { %v4055_v12 = vrot.slane %v254_v9, 1 }
 0x452   :  { %v4060_v14 = vsel %vm1271_vm7, %v1273_v8, %v4055_v12 }
 0x453   :  { %v4064_v15 = vpack.i.bf16 %v4060_v14, %v4057_v13 }
 0x455   :  { %3612 = vrot.lane.b32.xlu0 %v4064_v15, %s3810_s25 }
 0x459   :  { %1015 = vrot.lane.b32.xlu0 %v3963_v57, %s3816_s17 }
 0x45d   :  { %501 = vrot.lane.b32.xlu1 %v3960_v56, %s3814_s15  ;;  %1281 = vrot.lane.b32.xlu0 %v4055_v12, %s3810_s25 }
 0x461   :  { %505 = vrot.lane.b32.xlu1 %v3970_v61, %s3814_s15  ;;  %1523 = vrot.lane.b32.xlu0 %v4055_v12, %s3812_s30 }
 0x465   :  { %3607 = vrot.lane.b32.xlu1 %v3967_v59, %s3817_s18  ;;  %1513 = vrot.lane.b32.xlu0 %v4057_v13, %s3814_s15 }
 0x469   :  { %759 = vrot.lane.b32.xlu1 %v3963_v57, %s3815_s16  ;;  %1517 = vrot.lane.b32.xlu0 %v4055_v12, %s3814_s15 }
 0x46d   :  { %1023 = vrot.lane.b32.xlu1 %v3970_v61, %s3817_s18  ;;  %3627 = vrot.lane.b32.xlu0 %v4064_v15, %s3817_s18 }
 0x471   :  { %1013 = vrot.lane.b32.xlu1 %v3960_v56, %s3816_s17  ;;  %1769 = vrot.lane.b32.xlu0 %v4060_v14, %s3815_s16 }
 0x475   :  { %1017 = vrot.lane.b32.xlu1 %v3970_v61, %s3816_s17  ;;  %2031 = vrot.lane.b32.xlu0 %v4055_v12, %s3817_s18 }
 0x479   :  { %3617 = vrot.lane.b32.xlu1 %v4064_v15, %s3812_s30  ;;  %2023 = vrot.lane.b32.xlu0 %v4060_v14, %s3816_s17 }
 0x47d   :  { %3622 = vrot.lane.b32.xlu1 %v4064_v15, %s3813_s14 }
 0x481   :  { %1515 = vrot.lane.b32.xlu1 %v4060_v14, %s3814_s15 }
 0x485   :  { %1777 = vrot.lane.b32.xlu1 %v4055_v12, %s3813_s14 }
 0x489   :  { %1767 = vrot.lane.b32.xlu1 %v4057_v13, %s3815_s16 }
 0x48d   :  { %1771 = vrot.lane.b32.xlu1 %v4055_v12, %s3815_s16 }
 0x491   :  { %2021 = vrot.lane.b32.xlu1 %v4057_v13, %s3816_s17 }
 0x495   :  { %2025 = vrot.lane.b32.xlu1 %v4055_v12, %s3816_s17 }
 0x49c   :  { %v384_v54 = vpop.xlane.xlu1 %383 }
 0x49d   :  { %3682 = vrcp.f32 %v384_v54 }
 0x4a0   :  { %v387_v56 = vpop.xlane.xlu0 %386  ;;  %v402_v16 = vpop.permute.xlu1 %401 }
 0x4a1   :  { %3684 = vrcp.f32 %v387_v56 }
 0x4a4   :  { %v3593_v57 = vpop.permute.xlu0 %3592  ;;  %v3598_v26 = vpop.permute.xlu1 %3597 }
 0x4a5   :  { %v3595_v17 = vunpack.i.h.bf16 %v3593_v57  ;;  %v3594_v18 = vunpack.i.l.bf16 %v3593_v57  ;;  %v3600_v31 = vunpack.i.h.bf16 %v3598_v26  ;;  %v3599_v32 = vunpack.i.l.bf16 %v3598_v26 }
 0x4a7   :  { %v3482_v19 = vpack.c.bf16 %v3595_v17, %v3594_v18  ;;  %v3683_v22 = vpop.eup %3682  ;;  %v3485_v35 = vpack.c.bf16 %v3600_v31, %v3599_v32 }
 0x4a8   :  { %v3603_v20 = vpop.permute.xlu0 %3602  ;;  %v394_v28 = vmul.f32 %v3683_v22, %v4022_v55  ;;  %v512_v37 = vpop.permute.xlu1 %511 }
 0x4a9   :  { %v3605_v23 = vunpack.i.h.bf16 %v3603_v20  ;;  %v3604_v24 = vunpack.i.l.bf16 %v3603_v20  ;;  %3483 = vmatpush3.bf16.msra.mxu1 %v3482_v19 }
 0x4aa   :  { %3157 = vmatprep.subr.mxu1 %v3809_v25 }
 0x4ab   :  { %v3492_v27 = vpack.c.bf16 %v3605_v23, %v3604_v24  ;;  %v3685_v30 = vpop.eup %3684 }
 0x4ac   :  { %v504_v29 = vpop.permute.xlu0 %503  ;;  %v395_v33 = vmul.f32 %v3685_v30, %v4026_v41 }
 0x4ad   :  { %3158 = vmatpush3.msk.msra.mxu1 %vm414_vm8, %v402_v16  ;;  %3494 = vmatpush3.bf16.xpose.msk.msra.mxu0 %vm3986_vm4, %v3492_v27 }
 0x4ae   :  { %3160 = vmatmul.mubr.msk.f32.vlgmr.msra.gmra.mrb[6].mxu1 %vm362_vm5, %v394_v28  ;;  %3484 = vmatprep.subr.bf16.mxu1 %v3807_v21 }
 0x4af   :  { %3162 = vmatprep.mubr.msk.f32.mxu1 %vm3808_vm1, %v3809_v25  ;;  %3202 = vmatprep.subr.mxu0 %v3809_v25 }
 0x4b0   :  { %v768_v34 = vpop.permute.xlu0 %767 }
 0x4b2   :  { %3163 = vmatmul.mubr.msk.f32.gmra.mrb[8].mxu1 %vm362_vm5, %v395_v33 }
 0x4b3   :  { %3165 = vmatprep.mubr.msk.f32.mxu1 %vm3808_vm1, %v3809_v25 }
 0x4b4   :  { %3487 = vmatpush3.bf16.xpose.msk.msra.mxu1 %vm3986_vm4, %v3485_v35  ;;  %v758_v36 = vpop.permute.xlu0 %757 }
 0x4b5   :  { %3203 = vmatpush3.xpose.msk.msra.mxu0 %vm266_vm3, %v768_v34  ;;  %3172 = vmatprep.subr.mxu1 %v3809_v25 }
 0x4b6   :  { %3498 = vmatprep.subr.bf16.mxu0 %v3807_v21 }
 0x4b8   :  { %3205 = vmatmul.mubr.msk.f32.vlgmr.msra.gmra.mrb[10].mxu0 %vm266_vm3, %v758_v36  ;;  %v762_v49 = vpop.permute.xlu0 %761 }
 0x4b9   :  { %3207 = vmatprep.mubr.msk.f32.mxu0 %vm3808_vm1, %v3809_v25 }
 0x4bc   :  { %3173 = vmatpush3.xpose.msk.msra.mxu1 %vm266_vm3, %v512_v37 }
 0x4bd   :  { %3488 = vmatprep.subr.bf16.mxu1 %v3807_v21 }
 0x4c7   :  { %v3613_v51 = vpop.permute.xlu0 %3612 }
 0x4c8   :  { %v3615_v52 = vunpack.i.h.bf16 %v3613_v51  ;;  %v3614_v53 = vunpack.i.l.bf16 %v3613_v51 }
 0x4ca   :  { %v3506_v41 = vpack.c.bf16 %v3615_v52, %v3614_v53 }
 0x4cb   :  { %v1016_v58 = vpop.permute.xlu0 %1015 }
 0x4cf   :  { %v1282_v62 = vpop.permute.xlu0 %1281 }
 0x4d3   :  { %v1524_v2 = vpop.permute.xlu0 %1523 }
 0x4d7   :  { %v1514_v4 = vpop.permute.xlu0 %1513 }
 0x4d9   :  { %v390_v38 = vpop.xlane.xlu1 %389 }
 0x4da   :  { %3686 = vrcp.f32 %v390_v38 }
 0x4db   :  { %v1518_v9 = vpop.permute.xlu0 %1517 }
 0x4dd   :  { %v502_v40 = vpop.permute.xlu1 %501 }
 0x4e1   :  { %v506_v42 = vpop.permute.xlu1 %505 }
 0x4e4   :  { %v3687_v43 = vpop.eup %3686 }
 0x4e5   :  { %v3608_v44 = vpop.permute.xlu1 %3607  ;;  %v396_v45 = vmul.f32 %v3687_v43, %v4048_v1 }
 0x4e6   :  { %v3610_v46 = vunpack.i.h.bf16 %v3608_v44  ;;  %v3609_v47 = vunpack.i.l.bf16 %v3608_v44 }
 0x4e7   :  { %3166 = vmatmul.mubr.msk.f32.gmra.mrb[10].mxu1 %vm362_vm5, %v396_v45 }
 0x4e8   :  { %v3499_v48 = vpack.c.bf16 %v3610_v46, %v3609_v47  ;;  %3174 = vmatprep.mubr.msk.f32.mxu1 %vm3808_vm1, %v3809_v25 }
 0x4e9   :  { %v760_v39 = vpop.permute.xlu1 %759 }
 0x4ea   :  { %3208 = vmatmul.mubr.msk.f32.gmra.mrb[12].mxu0 %vm266_vm3, %v760_v39 }
 0x4eb   :  { %3501 = vmatpush3.bf16.xpose.msk.msra.mxu0 %vm3986_vm4, %v3499_v48  ;;  %3175 = vmatmul.mubr.msk.f32.vlgmr.msra.gmra.mrb[12].mxu1 %vm266_vm3, %v502_v40 }
 0x4ec   :  { %3210 = vmatprep.mubr.msk.f32.mxu0 %vm3808_vm1, %v3809_v25  ;;  %3177 = vmatprep.mubr.msk.f32.mxu1 %vm3808_vm1, %v3809_v25 }
 0x4ed   :  { %v1024_v50 = vpop.permute.xlu1 %1023  ;;  %3232 = vmatprep.subr.mxu0 %v3809_v25 }
 0x4ee   :  { %3211 = vmatmul.mubr.msk.f32.gmra.mrb[14].mxu0 %vm266_vm3, %v762_v49 }
 0x4ef   :  { %3178 = vmatmul.mubr.msk.f32.gmra.mrb[14].mxu1 %vm266_vm3, %v504_v29  ;;  %3234 = vmatprep.mubr.msk.f32.mxu0 %vm3808_vm1, %v3809_v25 }
 0x4f0   :  { %3180 = vmatprep.mubr.msk.f32.mxu1 %vm3808_vm1, %v3809_v25 }
 0x4f1   :  { %v1014_v55 = vpop.permute.xlu1 %1013 }
 0x4f3   :  { %3233 = vmatpush3.xpose.msk.msra.mxu0 %vm266_vm3, %v1024_v50  ;;  %3181 = vmatmul.mubr.msk.f32.gmra.mrb[16].mxu1 %vm266_vm3, %v506_v42 }
 0x4f4   :  { %3505 = vmatprep.subr.bf16.mxu0 %v3807_v21  ;;  %3189 = vmatprep.mubr.msk.f32.mxu1 %vm3808_vm1, %v3809_v25 }
 0x4f5   :  { %v1018_v60 = vpop.permute.xlu1 %1017 }
 0x4f6   :  { %3235 = vmatmul.mubr.msk.f32.vlgmr.msra.gmra.mrb[16].mxu0 %vm266_vm3, %v1014_v55 }
 0x4f7   :  { %3508 = vmatpush3.bf16.xpose.msk.msra.mxu0 %vm3986_vm4, %v3506_v41  ;;  %3237 = vmatprep.mubr.msk.f32.mxu0 %vm3808_vm1, %v3809_v25 }
 0x4f8   :  { %3262 = vmatprep.subr.mxu0 %v3809_v25 }
 0x4f9   :  { %v3618_v63 = vpop.permute.xlu1 %3617 }
 0x4fa   :  { %3238 = vmatmul.mubr.msk.f32.gmra.mrb[18].mxu0 %vm266_vm3, %v1016_v58  ;;  %v3620_v0 = vunpack.i.h.bf16 %v3618_v63  ;;  %v3619_v1 = vunpack.i.l.bf16 %v3618_v63 }
 0x4fb   :  { %3240 = vmatprep.mubr.msk.f32.mxu0 %vm3808_vm1, %v3809_v25 }
 0x4fc   :  { %v3513_v3 = vpack.c.bf16 %v3620_v0, %v3619_v1 }
 0x4fd   :  { %v3623_v5 = vpop.permute.xlu1 %3622 }
 0x4fe   :  { %3241 = vmatmul.mubr.msk.f32.gmra.mrb[20].mxu0 %vm266_vm3, %v1018_v60  ;;  %v3625_v7 = vunpack.i.h.bf16 %v3623_v5  ;;  %v3624_v8 = vunpack.i.l.bf16 %v3623_v5 }
 0x4ff   :  { %3263 = vmatpush3.xpose.msk.msra.mxu0 %vm266_vm3, %v1282_v62  ;;  %3264 = vmatprep.mubr.msk.f32.mxu0 %vm3808_vm1, %v3809_v25 }
 0x500   :  { %3512 = vmatprep.subr.bf16.mxu0 %v3807_v21  ;;  %v3520_v10 = vpack.c.bf16 %v3625_v7, %v3624_v8 }
 0x501   :  { %v1516_v11 = vpop.permute.xlu1 %1515 }
 0x502   :  { %3265 = vmatmul.mubr.msk.f32.vlgmr.msra.gmra.mrb[22].mxu0 %vm266_vm3, %v4057_v13  ;;  %v3628_v13 = vpop.permute.xlu0 %3627 }
 0x503   :  { %3515 = vmatpush3.bf16.xpose.msk.msra.mxu0 %vm3986_vm4, %v3513_v3  ;;  %3267 = vmatprep.mubr.msk.f32.mxu0 %vm3808_vm1, %v3809_v25  ;;  %v3630_v54 = vunpack.i.h.bf16 %v3628_v13  ;;  %v3629_v56 = vunpack.i.l.bf16 %v3628_v13 }
 0x504   :  { %3292 = vmatprep.subr.mxu0 %v3809_v25 }
 0x505   :  { %v3527_v57 = vpack.c.bf16 %v3630_v54, %v3629_v56 }
 0x506   :  { %3268 = vmatmul.mubr.msk.f32.gmra.mrb[24].mxu0 %vm266_vm3, %v4060_v14  ;;  %v1778_v14 = vpop.permute.xlu1 %1777  ;;  %v1770_v17 = vpop.permute.xlu0 %1769 }
 0x507   :  { %3270 = vmatprep.mubr.msk.f32.mxu0 %vm3808_vm1, %v3809_v25 }
 0x50a   :  { %3271 = vmatmul.mubr.msk.f32.gmra.mrb[26].mxu0 %vm266_vm3, %v4055_v12  ;;  %v1768_v16 = vpop.permute.xlu1 %1767  ;;  %v2032_v19 = vpop.permute.xlu0 %2031 }
 0x50b   :  { %3293 = vmatpush3.xpose.msk.msra.mxu0 %vm266_vm3, %v1524_v2  ;;  %3294 = vmatprep.mubr.msk.f32.mxu0 %vm3808_vm1, %v3809_v25 }
 0x50c   :  { %3519 = vmatprep.subr.bf16.mxu0 %v3807_v21 }
 0x50e   :  { %3295 = vmatmul.mubr.msk.f32.vlgmr.msra.gmra.mrb[28].mxu0 %vm266_vm3, %v1514_v4  ;;  %v1772_v18 = vpop.permute.xlu1 %1771  ;;  %v2024_v20 = vpop.permute.xlu0 %2023 }
 0x50f   :  { %3522 = vmatpush3.bf16.xpose.msk.msra.mxu0 %vm3986_vm4, %v3520_v10  ;;  %3297 = vmatprep.mubr.msk.f32.mxu0 %vm3808_vm1, %v3809_v25 }
 0x510   :  { %3322 = vmatprep.subr.mxu0 %v3809_v25 }
 0x512   :  { %3298 = vmatmul.mubr.msk.f32.gmra.mrb[30].mxu0 %vm266_vm3, %v1516_v11  ;;  %v2022_v6 = vpop.permute.xlu1 %2021 }
 0x513   :  { %3300 = vmatprep.mubr.msk.f32.mxu0 %vm3808_vm1, %v3809_v25 }
 0x516   :  { %3301 = vmatmul.mubr.msk.f32.gmra.mrb[32].mxu0 %vm266_vm3, %v1518_v9  ;;  %v2026_v22 = vpop.permute.xlu1 %2025 }
 0x517   :  { %3323 = vmatpush3.xpose.msk.msra.mxu0 %vm266_vm3, %v1778_v14  ;;  %3324 = vmatprep.mubr.msk.f32.mxu0 %vm3808_vm1, %v3809_v25 }
 0x518   :  { %3526 = vmatprep.subr.bf16.mxu0 %v3807_v21 }
 0x51a   :  { %3325 = vmatmul.mubr.msk.f32.vlgmr.msra.gmra.mrb[34].mxu0 %vm266_vm3, %v1768_v16 }
 0x51b   :  { %3529 = vmatpush3.bf16.xpose.msk.msra.mxu0 %vm3986_vm4, %v3527_v57  ;;  %3327 = vmatprep.mubr.msk.f32.mxu0 %vm3808_vm1, %v3809_v25 }
 0x51c   :  { %3352 = vmatprep.subr.mxu0 %v3809_v25 }
 0x51e   :  { %3328 = vmatmul.mubr.msk.f32.gmra.mrb[36].mxu0 %vm266_vm3, %v1770_v17 }
 0x51f   :  { %3330 = vmatprep.mubr.msk.f32.mxu0 %vm3808_vm1, %v3809_v25 }
 0x522   :  { %3331 = vmatmul.mubr.msk.f32.gmra.mrb[38].mxu0 %vm266_vm3, %v1772_v18 }
 0x523   :  { %3353 = vmatpush3.xpose.msk.msra.mxu0 %vm266_vm3, %v2032_v19  ;;  %3354 = vmatprep.mubr.msk.f32.mxu0 %vm3808_vm1, %v3809_v25 }
 0x524   :  { %3533 = vmatprep.subr.bf16.mxu0 %v3807_v21 }
 0x526   :  { %3355 = vmatmul.mubr.msk.f32.vlgmr.msra.gmra.mrb[40].mxu0 %vm266_vm3, %v2022_v6 }
 0x527   :  { %3357 = vmatprep.mubr.msk.f32.mxu0 %vm3808_vm1, %v3809_v25 }
 0x52a   :  { %3358 = vmatmul.mubr.msk.f32.gmra.mrb[42].mxu0 %vm266_vm3, %v2024_v20 }
 0x52b   :  { %3360 = vmatprep.mubr.msk.f32.mxu0 %vm3808_vm1, %v3809_v25 }
 0x52e   :  { %3361 = vmatmul.mubr.msk.f32.gmra.mrb[44].mxu0 %vm266_vm3, %v2026_v22 }
 0x52f   :  { %3386 = vmatprep.mubr.msk.f32.mxu0 %vm3808_vm1, %v3809_v25 }
 0x581   :  { %v483_v23 = vpop.f32.mrb[6].mxu1 }
 0x582   :  { %497 = vst.msk [vmem:[#allocation2] sm:$0xff] %vm266_vm3, %v483_v23  ;;  %v3161_v24 = vpop.f32.mrb[7].mxu1 }
 0x585   :  { %v488_v26 = vpop.f32.mrb[8].mxu1 }
 0x586   :  { %498 = vst.msk [vmem:[#allocation2 + $0x8] sm:$0xff] %vm266_vm3, %v488_v26  ;;  %v3164_v27 = vpop.f32.mrb[9].mxu1 }
 0x58b   :  { %v847_v28 = vpop.f32.mrb[10].mxu0 }
 0x58c   :  { %v4224_v29 = vmul.f32 0.35355338, %v847_v28  ;;  %v3206_v30 = vpop.f32.mrb[11].mxu0 }
 0x58e   :  { %v864_v31 = vsel %vm362_vm5, %v4224_v29, -inf }
 0x58f   :  { %865 = vmax.xlane.f32.xlu0 %v864_v31 }
 0x5ba   :  { %v493_v32 = vpop.f32.mrb[10].mxu1 }
 0x5bb   :  { %500 = vst.msk [vmem:[#allocation2 + $0x10] sm:$0x1] %vm499_vm9, %v493_v32  ;;  %v3167_v33 = vpop.f32.mrb[11].mxu1 }
 0x5bd   :  { %v852_v34 = vpop.f32.mrb[12].mxu0 }
 0x5be   :  { %v4229_v35 = vmul.f32 0.35355338, %v852_v34  ;;  %v4231_v36 = vpop.f32.mrb[12].mxu1  ;;  %v3209_v37 = vpop.f32.mrb[13].mxu0 }
 0x5bf   :  { %v3176_v38 = vpop.f32.mrb[13].mxu1 }
 0x5c0   :  { %v867_v40 = vsel %vm362_vm5, %v4229_v35, -inf }
 0x5c1   :  { %868 = vmax.xlane.f32.xlu0 %v867_v40  ;;  %v857_v42 = vpop.f32.mrb[14].mxu0 }
 0x5c2   :  { %v4235_v43 = vmul.f32 0.35355338, %v857_v42  ;;  %v4237_v44 = vpop.f32.mrb[14].mxu1  ;;  %v3212_v45 = vpop.f32.mrb[15].mxu0 }
 0x5c3   :  { %v3179_v46 = vpop.f32.mrb[15].mxu1 }
 0x5c4   :  { %v870_v47 = vsel %vm369_vm6, %v4235_v43, -inf }
 0x5c5   :  { %871 = vmax.xlane.f32.xlu1 %v870_v47 }
 0x5c6   :  { %v4241_v48 = vpop.f32.mrb[16].mxu1 }
 0x5c7   :  { %v3182_v39 = vpop.f32.mrb[17].mxu1 }
 0x5c9   :  { %v1103_v49 = vpop.f32.mrb[16].mxu0 }
 0x5ca   :  { %v4243_v50 = vmul.f32 0.35355338, %v1103_v49  ;;  %v3236_v51 = vpop.f32.mrb[17].mxu0 }
 0x5cc   :  { %v1120_v52 = vsel %vm362_vm5, %v4243_v50, -inf }
 0x5cd   :  { %1121 = vmax.xlane.f32.xlu0 %v1120_v52  ;;  %v1108_v53 = vpop.f32.mrb[18].mxu0 }
 0x5ce   :  { %v4247_v55 = vmul.f32 0.35355338, %v1108_v53  ;;  %v3239_v58 = vpop.f32.mrb[19].mxu0 }
 0x5d0   :  { %v1123_v41 = vsel %vm362_vm5, %v4247_v55, -inf }
 0x5d1   :  { %1124 = vmax.xlane.f32.xlu1 %v1123_v41  ;;  %v1113_v60 = vpop.f32.mrb[20].mxu0 }
 0x5d2   :  { %v4251_v62 = vmul.f32 0.35355338, %v1113_v60  ;;  %v3242_v63 = vpop.f32.mrb[21].mxu0 }
 0x5d4   :  { %v1126_v0 = vsel %vm369_vm6, %v4251_v62, -inf }
 0x5d5   :  { %1127 = vmax.xlane.f32.xlu0 %v1126_v0  ;;  %v1361_v1 = vpop.f32.mrb[22].mxu0 }
 0x5d6   :  { %v4255_v2 = vmul.f32 0.35355338, %v1361_v1  ;;  %v3266_v3 = vpop.f32.mrb[23].mxu0 }
 0x5d8   :  { %v1378_v4 = vsel %vm362_vm5, %v4255_v2, -inf }
 0x5d9   :  { %1379 = vmax.xlane.f32.xlu1 %v1378_v4  ;;  %v1366_v5 = vpop.f32.mrb[24].mxu0 }
 0x5da   :  { %v4259_v7 = vmul.f32 0.35355338, %v1366_v5  ;;  %v3269_v8 = vpop.f32.mrb[25].mxu0 }
 0x5dc   :  { %v1381_v9 = vsel %vm362_vm5, %v4259_v7, -inf }
 0x5dd   :  { %1382 = vmax.xlane.f32.xlu0 %v1381_v9  ;;  %v1371_v10 = vpop.f32.mrb[26].mxu0 }
 0x5de   :  { %v4263_v11 = vmul.f32 0.35355338, %v1371_v10  ;;  %v3272_v13 = vpop.f32.mrb[27].mxu0 }
 0x5e0   :  { %v1384_v14 = vsel %vm369_vm6, %v4263_v11, -inf }
 0x5e1   :  { %1385 = vmax.xlane.f32.xlu1 %v1384_v14  ;;  %v1603_v54 = vpop.f32.mrb[28].mxu0 }
 0x5e2   :  { %v4267_v56 = vmul.f32 0.35355338, %v1603_v54  ;;  %v3296_v57 = vpop.f32.mrb[29].mxu0 }
 0x5e4   :  { %v1620_v16 = vsel %vm362_vm5, %v4267_v56, -inf }
 0x5e5   :  { %1621 = vmax.xlane.f32.xlu0 %v1620_v16  ;;  %v1608_v17 = vpop.f32.mrb[30].mxu0 }
 0x5e6   :  { %v4271_v18 = vmul.f32 0.35355338, %v1608_v17  ;;  %v3299_v19 = vpop.f32.mrb[31].mxu0 }
 0x5e8   :  { %v1623_v6 = vsel %vm362_vm5, %v4271_v18, -inf }
 0x5e9   :  { %1624 = vmax.xlane.f32.xlu1 %v1623_v6  ;;  %v1613_v20 = vpop.f32.mrb[32].mxu0 }
 0x5ea   :  { %v4275_v22 = vmul.f32 0.35355338, %v1613_v20  ;;  %v3302_v23 = vpop.f32.mrb[33].mxu0 }
 0x5eb   :  { %v4328_v23 = vmul.f32 0.35355338, %v4231_v36 }
 0x5ec   :  { %v1626_v24 = vsel %vm369_vm6, %v4275_v22, -inf }
 0x5ed   :  { %1627 = vmax.xlane.f32.xlu0 %v1626_v24  ;;  %v1857_v26 = vpop.f32.mrb[34].mxu0  ;;  %v4333_v24 = vmul.f32 0.35355338, %v4241_v48 }
 0x5ee   :  { %v4279_v27 = vmul.f32 0.35355338, %v1857_v26  ;;  %v3326_v28 = vpop.f32.mrb[35].mxu0  ;;  %v608_v26 = vsel %vm362_vm5, %v4328_v23, -inf }
 0x5ef   :  { %v614_v28 = vsel %vm369_vm6, %v4333_v24, -inf }
 0x5f0   :  { %v1874_v30 = vsel %vm362_vm5, %v4279_v27, -inf }
 0x5f1   :  { %1875 = vmax.xlane.f32.xlu1 %v1874_v30  ;;  %v1862_v31 = vpop.f32.mrb[36].mxu0 }
 0x5f2   :  { %v4283_v32 = vmul.f32 0.35355338, %v1862_v31  ;;  %v3329_v33 = vpop.f32.mrb[37].mxu0 }
 0x5f4   :  { %v1877_v34 = vsel %vm362_vm5, %v4283_v32, -inf }
 0x5f5   :  { %1878 = vmax.xlane.f32.xlu0 %v1877_v34  ;;  %v1867_v37 = vpop.f32.mrb[38].mxu0 }
 0x5f6   :  { %v4287_v38 = vmul.f32 0.35355338, %v1867_v37  ;;  %v3332_v40 = vpop.f32.mrb[39].mxu0 }
 0x5f8   :  { %v1880_v42 = vsel %vm369_vm6, %v4287_v38, -inf }
 0x5f9   :  { %1881 = vmax.xlane.f32.xlu1 %v1880_v42  ;;  %v2111_v45 = vpop.f32.mrb[40].mxu0 }
 0x5fa   :  { %v4291_v46 = vmul.f32 0.35355338, %v2111_v45  ;;  %v3356_v47 = vpop.f32.mrb[41].mxu0 }
 0x5fc   :  { %v2128_v39 = vsel %vm362_vm5, %v4291_v46, -inf }
 0x5fd   :  { %2129 = vmax.xlane.f32.xlu0 %v2128_v39  ;;  %v2116_v49 = vpop.f32.mrb[42].mxu0 }
 0x5fe   :  { %v4295_v51 = vmul.f32 0.35355338, %v2116_v49  ;;  %v3359_v52 = vpop.f32.mrb[43].mxu0 }
 0x600   :  { %v2131_v53 = vsel %vm362_vm5, %v4295_v51, -inf }
 0x601   :  { %2132 = vmax.xlane.f32.xlu1 %v2131_v53  ;;  %v2121_v58 = vpop.f32.mrb[44].mxu0  ;;  %v4357_v53 = vmul.f32 0.35355338, %v4237_v44 }
 0x602   :  { %v4299_v41 = vmul.f32 0.35355338, %v2121_v58  ;;  %v3362_v60 = vpop.f32.mrb[45].mxu0 }
 0x604   :  { %v2134_v63 = vsel %vm369_vm6, %v4299_v41, -inf }
 0x605   :  { %2135 = vmax.xlane.f32.xlu0 %v2134_v63  ;;  %v611_v63 = vsel %vm362_vm5, %v4357_v53, -inf }
 0x61c   :  { %v866_v0 = vpop.xlane.xlu0 %865 }
 0x61d   :  { %v873_v1 = vsub.f32 %v4224_v29, %v866_v0 }
 0x61f   :  { %v876_v3 = vmul.f32 1.442695, %v873_v1 }
 0x621   :  { %3688 = vpow2.f32 %v876_v3 }
 0x62b   :  { %v4304_v4 = vpop.eup %3688 }
 0x62c   :  { %v882_v5 = vsel %vm362_vm5, %v4304_v4, 0.0 }
 0x62d   :  { %883 = vadd.xlane.f32.xlu0 %v882_v5 }
 0x643   :  { %3632 = vrot.lane.b32.xlu0 %v3967_v59, %s3818_s19 }
 0x64e   :  { %v869_v8 = vpop.xlane.xlu0 %868 }
 0x64f   :  { %v874_v9 = vsub.f32 %v4229_v35, %v869_v8 }
 0x651   :  { %v878_v10 = vmul.f32 1.442695, %v874_v9 }
 0x652   :  { %v872_v13 = vpop.xlane.xlu1 %871 }
 0x653   :  { %3690 = vpow2.f32 %v878_v10  ;;  %v875_v30 = vsub.f32 %v4235_v43, %v872_v13 }
 0x655   :  { %v880_v36 = vmul.f32 1.442695, %v875_v30 }
 0x65a   :  { %v1122_v31 = vpop.xlane.xlu0 %1121 }
 0x65b   :  { %v1129_v33 = vsub.f32 %v4243_v50, %v1122_v31 }
 0x65d   :  { %v4311_v14 = vpop.eup %3690  ;;  %v1132_v37 = vmul.f32 1.442695, %v1129_v33 }
 0x65e   :  { %v1125_v29 = vpop.xlane.xlu1 %1124  ;;  %v885_v54 = vsel %vm362_vm5, %v4311_v14, 0.0 }
 0x65f   :  { %v1130_v57 = vsub.f32 %v4247_v55, %v1125_v29  ;;  %886 = vadd.xlane.f32.xlu1 %v885_v54 }
 0x661   :  { %v1134_v16 = vmul.f32 1.442695, %v1130_v57 }
 0x662   :  { %v1128_v34 = vpop.xlane.xlu0 %1127 }
 0x663   :  { %3692 = vpow2.f32 %v1134_v16  ;;  %v1131_v48 = vsub.f32 %v4251_v62, %v1128_v34 }
 0x665   :  { %v1136_v40 = vmul.f32 1.442695, %v1131_v48 }
 0x666   :  { %v1380_v17 = vpop.xlane.xlu1 %1379 }
 0x667   :  { %v1387_v19 = vsub.f32 %v4255_v2, %v1380_v17 }
 0x669   :  { %v1390_v6 = vmul.f32 1.442695, %v1387_v19 }
 0x66a   :  { %v1383_v42 = vpop.xlane.xlu0 %1382 }
 0x66b   :  { %3694 = vpow2.f32 %v1390_v6  ;;  %v1388_v45 = vsub.f32 %v4259_v7, %v1383_v42 }
 0x66c   :  { %3696 = vpow2.f32 %v880_v36 }
 0x66d   :  { %v4317_v35 = vpop.eup %3692  ;;  %3698 = vpow2.f32 %v1132_v37  ;;  %v1392_v43 = vmul.f32 1.442695, %v1388_v45 }
 0x66e   :  { %v1141_v20 = vsel %vm362_vm5, %v4317_v35, 0.0  ;;  %3700 = vpow2.f32 %v1136_v40  ;;  %v1386_v62 = vpop.xlane.xlu1 %1385 }
 0x66f   :  { %1142 = vadd.xlane.f32.xlu0 %v1141_v20  ;;  %3702 = vpow2.f32 %v1392_v43  ;;  %v1389_v7 = vsub.f32 %v4263_v11, %v1386_v62 }
 0x670   :  { %645 = vrot.lane.b32.xlu1 %v3970_v61, %s3818_s19 }
 0x671   :  { %v1394_v60 = vmul.f32 1.442695, %v1389_v7 }
 0x672   :  { %v1622_v1 = vpop.xlane.xlu0 %1621 }
 0x673   :  { %3704 = vpow2.f32 %v1394_v60  ;;  %v1629_v17 = vsub.f32 %v4267_v56, %v1622_v1 }
 0x674   :  { %3637 = vrot.lane.b32.xlu1 %v3967_v59, %s3819_s20 }
 0x675   :  { %v4325_v55 = vpop.eup %3694  ;;  %v1632_v6 = vmul.f32 1.442695, %v1629_v17 }
 0x676   :  { %v1396_v2 = vsel %vm362_vm5, %v4325_v55, 0.0  ;;  %v4343_v47 = vpop.eup %3696  ;;  %v1625_v19 = vpop.xlane.xlu1 %1624 }
 0x677   :  { %1397 = vadd.xlane.f32.xlu0 %v1396_v2  ;;  %v888_v50 = vsel %vm369_vm6, %v4343_v47, 0.0  ;;  %v4349_v39 = vpop.eup %3698  ;;  %v1630_v20 = vsub.f32 %v4271_v18, %v1625_v19  ;;  %3706 = vpow2.f32 %v1632_v6 }
 0x678   :  { %v1138_v49 = vsel %vm362_vm5, %v4349_v39, 0.0  ;;  %v4353_v52 = vpop.eup %3700 }
 0x679   :  { %v1144_v58 = vsel %vm369_vm6, %v4353_v52, 0.0  ;;  %v4363_v0 = vpop.eup %3702 }
 0x67a   :  { %v1399_v3 = vsel %vm362_vm5, %v4363_v0, 0.0  ;;  %v1628_v11 = vpop.xlane.xlu0 %1627 }
 0x67b   :  { %609 = vmax.xlane.f32.xlu0 %v608_v26  ;;  %v1631_v2 = vsub.f32 %v4275_v22, %v1628_v11 }
 0x67d   :  { %v4367_v5 = vpop.eup %3704  ;;  %v1636_v26 = vmul.f32 1.442695, %v1631_v2 }
 0x67e   :  { %v1402_v9 = vsel %vm369_vm6, %v4367_v5, 0.0  ;;  %v1876_v31 = vpop.xlane.xlu1 %1875 }
 0x67f   :  { %615 = vmax.xlane.f32.xlu0 %v614_v28  ;;  %v1883_v48 = vsub.f32 %v4279_v27, %v1876_v31 }
 0x681   :  { %v4385_v28 = vpop.eup %3706  ;;  %v1886_v42 = vmul.f32 1.442695, %v1883_v48 }
 0x682   :  { %v1879_v44 = vpop.xlane.xlu0 %1878  ;;  %v1638_v30 = vsel %vm362_vm5, %v4385_v28, 0.0 }
 0x683   :  { %v1884_v43 = vsub.f32 %v4283_v32, %v1879_v44 }
 0x685   :  { %v1888_v7 = vmul.f32 1.442695, %v1884_v43 }
 0x686   :  { %v4393_v18 = vpop.xlane.xlu1 %1881 }
 0x68a   :  { %v4369_v8 = vpop.xlane.xlu0 %2129 }
 0x68e   :  { %v2133_v22 = vpop.xlane.xlu1 %2132 }
 0x692   :  { %v4373_v10 = vpop.xlane.xlu0 %2135 }
 0x695   :  { %901 = vrot.lane.b32.xlu0 %v3970_v61, %s3819_s20 }
 0x698   :  { %889 = vadd.xlane.f32.xlu1 %v888_v50 }
 0x69c   :  { %1139 = vadd.xlane.f32.xlu1 %v1138_v49 }
 0x6a0   :  { %1145 = vadd.xlane.f32.xlu1 %v1144_v58 }
 0x6a4   :  { %612 = vmax.xlane.f32.xlu1 %v611_v63 }
 0x6a8   :  { %1400 = vadd.xlane.f32.xlu1 %v1399_v3 }
 0x6b4   :  { %1403 = vadd.xlane.f32.xlu0 %v1402_v9 }
 0x6b9   :  { %3642 = vrot.lane.b32.xlu1 %v3967_v59, %s3820_s21  ;;  %v1634_v59 = vmul.f32 1.442695, %v1630_v20  ;;  %v2137_v20 = vsub.f32 %v4291_v46, %v4369_v8 }
 0x6ba   :  { %v4377_v13 = vpop.xlane.xlu0 %883 }
 0x6bb   :  { %3708 = vpow2.f32 %v1634_v59  ;;  %v2140_v2 = vmul.f32 1.442695, %v2137_v20 }
 0x6bc   :  { %3710 = vpow2.f32 %v1636_v26  ;;  %v2138_v26 = vsub.f32 %v4295_v51, %v2133_v22 }
 0x6bd   :  { %3712 = vpow2.f32 %v1886_v42 }
 0x6be   :  { %v3633_v29 = vpop.permute.xlu0 %3632 }
 0x6bf   :  { %v3635_v54 = vunpack.i.h.bf16 %v3633_v29  ;;  %v3634_v57 = vunpack.i.l.bf16 %v3633_v29 }
 0x6c1   :  { %v3489_v16 = vpack.c.bf16 %v3635_v54, %v3634_v57 }
 0x6c3   :  { %3490 = vmatpush3.bf16.msra.mxu1 %v3489_v16 }
 0x6c4   :  { %3187 = vmatprep.subr.mxu1 %v3809_v25 }
 0x6c5   :  { %v4389_v56 = vpop.eup %3708 }
 0x6c6   :  { %v4395_v36 = vpop.eup %3710 }
 0x6c7   :  { %v1644_v33 = vsel %vm369_vm6, %v4395_v36, 0.0  ;;  %v4413_v27 = vpop.eup %3712 }
 0x6c8   :  { %v1892_v1 = vsel %vm362_vm5, %v4413_v27, 0.0 }
 0x6ca   :  { %1157 = vrot.lane.b32.xlu0 %v3970_v61, %s3820_s21  ;;  %v1641_v61 = vsel %vm362_vm5, %v4389_v56, 0.0 }
 0x6dd   :  { %1639 = vadd.xlane.f32.xlu1 %v1638_v30  ;;  %v2142_v30 = vmul.f32 1.442695, %v2138_v26 }
 0x6e1   :  { %1642 = vadd.xlane.f32.xlu1 %v1641_v61 }
 0x6e9   :  { %1645 = vadd.xlane.f32.xlu0 %v1644_v33 }
 0x6ec   :  { %v4399_v34 = vpop.xlane.xlu1 %886 }
 0x6f0   :  { %v646_v37 = vpop.permute.xlu1 %645 }
 0x6f1   :  { %3188 = vmatpush3.msk.msra.mxu1 %vm414_vm8, %v646_v37 }
 0x6f2   :  { %3647 = vrot.lane.b32.xlu1 %v4064_v15, %s3811_s29  ;;  %3495 = vmatprep.subr.bf16.mxu1 %v3807_v21 }
 0x6fc   :  { %v4406_v40 = vpop.xlane.xlu0 %1142 }
 0x704   :  { %v4408_v45 = vpop.xlane.xlu0 %1397 }
 0x708   :  { %v610_v50 = vpop.xlane.xlu0 %609 }
 0x709   :  { %v617_v62 = vsub.f32 %v4328_v23, %v610_v50 }
 0x70b   :  { %v620_v49 = vmul.f32 1.442695, %v617_v62 }
 0x70c   :  { %v616_v58 = vpop.xlane.xlu0 %615 }
 0x70d   :  { %3714 = vpow2.f32 %v620_v49  ;;  %v619_v60 = vsub.f32 %v4333_v24, %v616_v58  ;;  %v3638_v24 = vpop.permute.xlu1 %3637 }
 0x70e   :  { %3716 = vpow2.f32 %v1888_v7  ;;  %v3640_v7 = vunpack.i.h.bf16 %v3638_v24  ;;  %v3639_v58 = vunpack.i.l.bf16 %v3638_v24 }
 0x70f   :  { %v624_v63 = vmul.f32 1.442695, %v619_v60 }
 0x711   :  { %3718 = vpow2.f32 %v624_v63  ;;  %v3496_v63 = vpack.c.bf16 %v3640_v7, %v3639_v58 }
 0x716   :  { %1893 = vadd.xlane.f32.xlu1 %v1892_v1 }
 0x717   :  { %v3715_v3 = vpop.eup %3714 }
 0x718   :  { %v626_v32 = vsel %vm362_vm5, %v3715_v3, 0.0  ;;  %v4418_v11 = vpop.eup %3716 }
 0x719   :  { %v1895_v23 = vsel %vm362_vm5, %v4418_v11, 0.0 }
 0x71a   :  { %627 = vadd.xlane.f32.xlu1 %v626_v32 }
 0x71b   :  { %v4422_v44 = vpop.eup %3718 }
 0x71c   :  { %v632_v9 = vsel %vm369_vm6, %v4422_v44, 0.0 }
 0x71e   :  { %1896 = vadd.xlane.f32.xlu1 %v1895_v23 }
 0x722   :  { %633 = vadd.xlane.f32.xlu1 %v632_v9 }
 0x725   :  { %v4426_v29 = vpop.xlane.xlu1 %889 }
 0x729   :  { %v4428_v54 = vpop.xlane.xlu1 %1139 }
 0x72d   :  { %v4430_v57 = vpop.xlane.xlu1 %1145 }
 0x731   :  { %v613_v16 = vpop.xlane.xlu1 %612 }
 0x732   :  { %v618_v17 = vsub.f32 %v4357_v53, %v613_v16  ;;  %v2139_v53 = vsub.f32 %v4299_v41, %v4373_v10  ;;  %v1885_v10 = vsub.f32 %v4287_v38, %v4393_v18 }
 0x733   :  { %3652 = vrot.lane.b32.xlu1 %v4064_v15, %s3818_s19 }
 0x734   :  { %v622_v19 = vmul.f32 1.442695, %v618_v17  ;;  %v2144_v31 = vmul.f32 1.442695, %v2139_v53  ;;  %v1890_v33 = vmul.f32 1.442695, %v1885_v10 }
 0x735   :  { %v4466_v42 = vpop.xlane.xlu1 %1400 }
 0x736   :  { %3720 = vpow2.f32 %v622_v19 }
 0x737   :  { %3722 = vpow2.f32 %v2140_v2 }
 0x738   :  { %3724 = vpow2.f32 %v2142_v30 }
 0x739   :  { %3726 = vpow2.f32 %v2144_v31  ;;  %v3643_v43 = vpop.permute.xlu1 %3642 }
 0x73a   :  { %3728 = vpow2.f32 %v1890_v33  ;;  %v3645_v2 = vunpack.i.h.bf16 %v3643_v43  ;;  %v3644_v26 = vunpack.i.l.bf16 %v3643_v43 }
 0x740   :  { %v4435_v6 = vpop.eup %3720 }
 0x741   :  { %v629_v59 = vsel %vm362_vm5, %v4435_v6, 0.0  ;;  %v4444_v61 = vpop.eup %3722 }
 0x742   :  { %630 = vadd.xlane.f32.xlu0 %v629_v59  ;;  %v2146_v46 = vsel %vm362_vm5, %v4444_v61, 0.0  ;;  %v4448_v8 = vpop.eup %3724 }
 0x743   :  { %v2149_v51 = vsel %vm362_vm5, %v4448_v8, 0.0  ;;  %v4454_v22 = vpop.eup %3726 }
 0x744   :  { %v2152_v41 = vsel %vm369_vm6, %v4454_v22, 0.0  ;;  %v4462_v37 = vpop.eup %3728 }
 0x745   :  { %v1898_v48 = vsel %vm369_vm6, %v4462_v37, 0.0 }
 0x757   :  { %2147 = vadd.xlane.f32.xlu1 %v2146_v46 }
 0x758   :  { %1415 = vrot.lane.b32.xlu0 %v4055_v12, %s3811_s29 }
 0x75b   :  { %2150 = vadd.xlane.f32.xlu1 %v2149_v51 }
 0x75f   :  { %2153 = vadd.xlane.f32.xlu1 %v2152_v41 }
 0x76a   :  { %v4472_v38 = vpop.xlane.xlu1 %1639 }
 0x76e   :  { %v4476_v18 = vpop.xlane.xlu1 %1642 }
 0x770   :  { %3662 = vrot.lane.b32.xlu1 %v4064_v15, %s3820_s21 }
 0x772   :  { %v4480_v50 = vpop.permute.xlu1 %3647 }
 0x773   :  { %v3649_v30 = vunpack.i.l.bf16 %v4480_v50 }
 0x777   :  { %1899 = vadd.xlane.f32.xlu0 %v1898_v48 }
 0x78d   :  { %1657 = vrot.lane.b32.xlu0 %v4055_v12, %s3818_s19 }
 0x791   :  { %3657 = vrot.lane.b32.xlu0 %v4064_v15, %s3819_s20 }
 0x795   :  { %1911 = vrot.lane.b32.xlu0 %v4055_v12, %s3819_s20 }
 0x799   :  { %2165 = vrot.lane.b32.xlu0 %v4055_v12, %s3820_s21  ;;  %v902_v12 = vpop.permute.xlu0 %901 }
 0x79d   :  { %v1404_v1 = vpop.xlane.xlu0 %1403 }
 0x7a1   :  { %v1158_v32 = vpop.permute.xlu0 %1157 }
 0x7a3   :  { %v4482_v62 = vpop.xlane.xlu1 %1893 }
 0x7a5   :  { %v4492_v24 = vpop.xlane.xlu0 %1645 }
 0x7a7   :  { %v628_v49 = vpop.xlane.xlu1 %627 }
 0x7a8   :  { %3730 = vrcp.f32 %v628_v49 }
 0x7ab   :  { %v4490_v23 = vpop.xlane.xlu1 %1896 }
 0x7b2   :  { %v3731_v60 = vpop.eup %3730 }
 0x7b3   :  { %v638_v15 = vmul.f32 %v3731_v60, %v3715_v3  ;;  %v634_v3 = vpop.xlane.xlu1 %633 }
 0x7b5   :  { %3190 = vmatmul.mubr.msk.f32.vlgmr.msra.gmra.mrb[18].mxu1 %vm362_vm5, %v638_v15 }
 0x7b6   :  { %3497 = vmatpush3.bf16.msra.mxu1 %v3496_v63  ;;  %3192 = vmatprep.mubr.msk.f32.mxu1 %vm3808_vm1, %v3809_v25 }
 0x7b7   :  { %3217 = vmatprep.subr.mxu1 %v3809_v25  ;;  %v3653_v31 = vpop.permute.xlu1 %3652 }
 0x7b8   :  { %v3655_v41 = vunpack.i.h.bf16 %v3653_v31  ;;  %v3654_v10 = vunpack.i.l.bf16 %v3653_v31 }
 0x7ba   :  { %3218 = vmatpush3.msk.msra.mxu1 %vm414_vm8, %v902_v12  ;;  %v3517_v48 = vpack.c.bf16 %v3655_v41, %v3654_v10 }
 0x7bb   :  { %3502 = vmatprep.subr.bf16.mxu1 %v3807_v21 }
 0x7cf   :  { %v631_v9 = vpop.xlane.xlu0 %630 }
 0x7d0   :  { %3732 = vrcp.f32 %v631_v9 }
 0x7d1   :  { %3734 = vrcp.f32 %v634_v3 }
 0x7d2   :  { %3736 = vrcp.f32 %v4377_v13 }
 0x7d3   :  { %3738 = vrcp.f32 %v4399_v34  ;;  %v1416_v46 = vpop.permute.xlu0 %1415 }
 0x7d4   :  { %3740 = vrcp.f32 %v4426_v29 }
 0x7d5   :  { %3742 = vrcp.f32 %v4428_v54  ;;  %v3650_v54 = vunpack.i.h.bf16 %v4480_v50 }
 0x7d6   :  { %3744 = vrcp.f32 %v4406_v40 }
 0x7d7   :  { %3746 = vrcp.f32 %v4430_v57  ;;  %v3510_v53 = vpack.c.bf16 %v3650_v54, %v3649_v30  ;;  %v2282_v30 = vld [vmem:[%s4882_s5 + $0x10] sm:$0xff] }
 0x7d8   :  { %3748 = vrcp.f32 %v4408_v45 }
 0x7d9   :  { %3750 = vrcp.f32 %v4466_v42 }
 0x7da   :  { %v3733_v16 = vpop.eup %3732  ;;  %3752 = vrcp.f32 %v1404_v1 }
 0x7db   :  { %v639_v17 = vmul.f32 %v3733_v16, %v4435_v6  ;;  %v3735_v19 = vpop.eup %3734  ;;  %v3503_v6 = vpack.c.bf16 %v3645_v2, %v3644_v26  ;;  %3754 = vrcp.f32 %v4472_v38 }
 0x7dc   :  { %v640_v20 = vmul.f32 %v3735_v19, %v4422_v44  ;;  %v3737_v59 = vpop.eup %3736  ;;  %3756 = vrcp.f32 %v4476_v18 }
 0x7dd   :  { %3193 = vmatmul.mubr.msk.f32.gmra.mrb[20].mxu1 %vm362_vm5, %v639_v17  ;;  %v894_v13 = vmul.f32 %v3737_v59, %v4304_v4  ;;  %v3739_v34 = vpop.eup %3738  ;;  %3758 = vrcp.f32 %v4492_v24 }
 0x7de   :  { %3195 = vmatprep.mubr.msk.f32.mxu1 %vm3808_vm1, %v3809_v25  ;;  %v895_v44 = vmul.f32 %v3739_v34, %v4311_v14  ;;  %v3741_v29 = vpop.eup %3740  ;;  %3760 = vrcp.f32 %v4482_v62 }
 0x7df   :  { %v896_v4 = vmul.f32 %v3741_v29, %v4343_v47  ;;  %v3743_v40 = vpop.eup %3742  ;;  %3762 = vrcp.f32 %v4490_v23  ;;  %v2281_v29 = vld [vmem:[%s4882_s5 + $0x8] sm:$0xff] }
 0x7e0   :  { %v1150_v14 = vmul.f32 %v3743_v40, %v4349_v39  ;;  %v3745_v57 = vpop.eup %3744 }
 0x7e1   :  { %3196 = vmatmul.mubr.msk.f32.gmra.mrb[22].mxu1 %vm362_vm5, %v640_v20  ;;  %v1151_v47 = vmul.f32 %v3745_v57, %v4317_v35  ;;  %v3747_v45 = vpop.eup %3746 }
 0x7e2   :  { %3219 = vmatprep.mubr.msk.f32.mxu1 %vm3808_vm1, %v3809_v25  ;;  %v1152_v39 = vmul.f32 %v3747_v45, %v4353_v52  ;;  %v3749_v51 = vpop.eup %3748 }
 0x7e3   :  { %v1408_v35 = vmul.f32 %v3749_v51, %v4325_v55  ;;  %v3751_v33 = vpop.eup %3750 }
 0x7e4   :  { %v2148_v42 = vpop.xlane.xlu1 %2147  ;;  %v1409_v52 = vmul.f32 %v3751_v33, %v4363_v0  ;;  %v3753_v43 = vpop.eup %3752 }
 0x7e5   :  { %3220 = vmatmul.mubr.msk.f32.vlgmr.msra.gmra.mrb[24].mxu1 %vm362_vm5, %v894_v13  ;;  %v1410_v38 = vmul.f32 %v3753_v43, %v4367_v5  ;;  %v3755_v49 = vpop.eup %3754 }
 0x7e6   :  { %3504 = vmatpush3.bf16.msra.mxu1 %v3503_v6  ;;  %3222 = vmatprep.mubr.msk.f32.mxu1 %vm3808_vm1, %v3809_v25  ;;  %v1650_v0 = vmul.f32 %v3755_v49, %v4385_v28  ;;  %v3757_v58 = vpop.eup %3756 }
 0x7e7   :  { %3247 = vmatprep.subr.mxu1 %v3809_v25  ;;  %v1651_v60 = vmul.f32 %v3757_v58, %v4389_v56  ;;  %v3759_v62 = vpop.eup %3758 }
 0x7e8   :  { %v2151_v55 = vpop.xlane.xlu1 %2150  ;;  %v1652_v1 = vmul.f32 %v3759_v62, %v4395_v36 }
 0x7e9   :  { %3223 = vmatmul.mubr.msk.f32.gmra.mrb[26].mxu1 %vm362_vm5, %v895_v44 }
 0x7ea   :  { %3248 = vmatpush3.msk.msra.mxu1 %vm414_vm8, %v1158_v32  ;;  %3225 = vmatprep.mubr.msk.f32.mxu1 %vm3808_vm1, %v3809_v25  ;;  %v3761_v32 = vpop.eup %3760 }
 0x7eb   :  { %3509 = vmatprep.subr.bf16.mxu1 %v3807_v21  ;;  %v1904_v56 = vmul.f32 %v3761_v32, %v4413_v27  ;;  %v3763_v9 = vpop.eup %3762 }
 0x7ec   :  { %v2154_v18 = vpop.xlane.xlu1 %2153  ;;  %v1905_v36 = vmul.f32 %v3763_v9, %v4418_v11 }
 0x7ed   :  { %3226 = vmatmul.mubr.msk.f32.gmra.mrb[28].mxu1 %vm362_vm5, %v896_v4 }
 0x7ee   :  { %3249 = vmatprep.mubr.msk.f32.mxu1 %vm3808_vm1, %v3809_v25 }
 0x7f0   :  { %v3663_v63 = vpop.permute.xlu1 %3662 }
 0x7f1   :  { %3250 = vmatmul.mubr.msk.f32.vlgmr.msra.gmra.mrb[30].mxu1 %vm362_vm5, %v1150_v14  ;;  %v3665_v23 = vunpack.i.h.bf16 %v3663_v63  ;;  %v3664_v24 = vunpack.i.l.bf16 %v3663_v63  ;;  %v2283_v14 = vld [vmem:[%s4882_s5 + $0x18] sm:$0xff] }
 0x7f2   :  { %3511 = vmatpush3.bf16.msra.mxu1 %v3510_v53  ;;  %3252 = vmatprep.mubr.msk.f32.mxu1 %vm3808_vm1, %v3809_v25  ;;  %v3537_v53 = vpack.c.bf16 %v2283_v14, %v2282_v30 }
 0x7f3   :  { %3277 = vmatprep.subr.mxu1 %v3809_v25  ;;  %v3531_v16 = vpack.c.bf16 %v3665_v23, %v3664_v24 }
 0x7f5   :  { %3253 = vmatmul.mubr.msk.f32.gmra.mrb[32].mxu1 %vm362_vm5, %v1151_v47 }
 0x7f6   :  { %3278 = vmatpush3.msk.msra.mxu1 %vm414_vm8, %v1416_v46  ;;  %3255 = vmatprep.mubr.msk.f32.mxu1 %vm3808_vm1, %v3809_v25 }
 0x7f7   :  { %3516 = vmatprep.subr.bf16.mxu1 %v3807_v21 }
 0x7f9   :  { %3256 = vmatmul.mubr.msk.f32.gmra.mrb[34].mxu1 %vm362_vm5, %v1152_v39 }
 0x7fa   :  { %3279 = vmatprep.mubr.msk.f32.mxu1 %vm3808_vm1, %v3809_v25 }
 0x7fd   :  { %3280 = vmatmul.mubr.msk.f32.vlgmr.msra.gmra.mrb[36].mxu1 %vm362_vm5, %v1408_v35 }
 0x7fe   :  { %3518 = vmatpush3.bf16.msra.mxu1 %v3517_v48  ;;  %3282 = vmatprep.mubr.msk.f32.mxu1 %vm3808_vm1, %v3809_v25 }
 0x7ff   :  { %3307 = vmatprep.subr.mxu1 %v3809_v25 }
 0x801   :  { %3283 = vmatmul.mubr.msk.f32.gmra.mrb[38].mxu1 %vm362_vm5, %v1409_v52 }
 0x802   :  { %3285 = vmatprep.mubr.msk.f32.mxu1 %vm3808_vm1, %v3809_v25 }
 0x804   :  { %v1900_v50 = vpop.xlane.xlu0 %1899 }
 0x805   :  { %3286 = vmatmul.mubr.msk.f32.gmra.mrb[40].mxu1 %vm362_vm5, %v1410_v38  ;;  %3764 = vrcp.f32 %v1900_v50 }
 0x806   :  { %3309 = vmatprep.mubr.msk.f32.mxu1 %vm3808_vm1, %v3809_v25  ;;  %3766 = vrcp.f32 %v2148_v42 }
 0x807   :  { %3768 = vrcp.f32 %v2151_v55 }
 0x808   :  { %v1658_v7 = vpop.permute.xlu0 %1657  ;;  %3770 = vrcp.f32 %v2154_v18 }
 0x809   :  { %3308 = vmatpush3.msk.msra.mxu1 %vm414_vm8, %v1658_v7 }
 0x80a   :  { %3310 = vmatmul.mubr.msk.f32.vlgmr.msra.gmra.mrb[42].mxu1 %vm362_vm5, %v1650_v0  ;;  %3523 = vmatprep.subr.bf16.mxu1 %v3807_v21 }
 0x80b   :  { %3312 = vmatprep.mubr.msk.f32.mxu1 %vm3808_vm1, %v3809_v25 }
 0x80c   :  { %v3658_v5 = vpop.permute.xlu0 %3657 }
 0x80d   :  { %v3660_v15 = vunpack.i.h.bf16 %v3658_v5  ;;  %v3659_v28 = vunpack.i.l.bf16 %v3658_v5 }
 0x80e   :  { %3313 = vmatmul.mubr.msk.f32.gmra.mrb[44].mxu1 %vm362_vm5, %v1651_v60 }
 0x80f   :  { %v3524_v12 = vpack.c.bf16 %v3660_v15, %v3659_v28  ;;  %3315 = vmatprep.mubr.msk.f32.mxu1 %vm3808_vm1, %v3809_v25  ;;  %v3765_v17 = vpop.eup %3764 }
 0x810   :  { %v1912_v3 = vpop.permute.xlu0 %1911  ;;  %v1906_v19 = vmul.f32 %v3765_v17, %v4462_v37  ;;  %v3767_v20 = vpop.eup %3766 }
 0x811   :  { %3525 = vmatpush3.bf16.msra.mxu1 %v3524_v12  ;;  %v2158_v11 = vmul.f32 %v3767_v20, %v4444_v61  ;;  %v3769_v59 = vpop.eup %3768 }
 0x812   :  { %3316 = vmatmul.mubr.msk.f32.gmra.mrb[46].mxu1 %vm362_vm5, %v1652_v1  ;;  %3337 = vmatprep.subr.mxu1 %v3809_v25  ;;  %v2159_v2 = vmul.f32 %v3769_v59, %v4448_v8  ;;  %v3771_v26 = vpop.eup %3770 }
 0x813   :  { %3339 = vmatprep.mubr.msk.f32.mxu1 %vm3808_vm1, %v3809_v25  ;;  %v2160_v37 = vmul.f32 %v3771_v26, %v4454_v22  ;;  %v2280_v22 = vld [vmem:[%s4882_s5] sm:$0xff] }
 0x814   :  { %v2166_v27 = vpop.permute.xlu0 %2165  ;;  %v3534_v40 = vpack.c.bf16 %v2281_v29, %v2280_v22 }
 0x815   :  { %3338 = vmatpush3.msk.msra.mxu1 %vm414_vm8, %v1912_v3 }
 0x816   :  { %3340 = vmatmul.mubr.msk.f32.vlgmr.msra.gmra.mrb[48].mxu1 %vm362_vm5, %v1904_v56  ;;  %3530 = vmatprep.subr.bf16.mxu1 %v3807_v21 }
 0x817   :  { %3532 = vmatpush3.bf16.msra.mxu1 %v3531_v16  ;;  %3342 = vmatprep.mubr.msk.f32.mxu1 %vm3808_vm1, %v3809_v25 }
 0x818   :  { %3367 = vmatprep.subr.mxu1 %v3809_v25  ;;  %3535 = vmatpush3.bf16.msra.mxu0 %v3534_v40  ;;  %v2956_v40 = vld [vmem:[%s4883_s6] ss:$0 sm:$0xff] }
 0x819   :  { %3536 = vmatprep.subr.bf16.mxu0 %v3807_v21 }
 0x81a   :  { %3343 = vmatmul.mubr.msk.f32.gmra.mrb[50].mxu1 %vm362_vm5, %v1905_v36 }
 0x81b   :  { %3368 = vmatpush3.msk.msra.mxu1 %vm414_vm8, %v2166_v27  ;;  %3345 = vmatprep.mubr.msk.f32.mxu1 %vm3808_vm1, %v3809_v25 }
 0x81c   :  { %3539 = vmatprep.subr.bf16.mxu1 %v3807_v21  ;;  %3538 = vmatpush3.bf16.msra.mxu0 %v3537_v53 }
 0x81d   :  { %3545 = vmatprep.subr.bf16.mxu0 %v3807_v21 }
 0x81e   :  { %3346 = vmatmul.mubr.msk.f32.gmra.mrb[52].mxu1 %vm362_vm5, %v1906_v19 }
 0x81f   :  { %3369 = vmatprep.mubr.msk.f32.mxu1 %vm3808_vm1, %v3809_v25 }
 0x822   :  { %3370 = vmatmul.mubr.msk.f32.vlgmr.msra.gmra.mrb[54].mxu1 %vm362_vm5, %v2158_v11 }
 0x823   :  { %3372 = vmatprep.mubr.msk.f32.mxu1 %vm3808_vm1, %v3809_v25 }
 0x826   :  { %3373 = vmatmul.mubr.msk.f32.gmra.mrb[56].mxu1 %vm362_vm5, %v2159_v2 }
 0x827   :  { %3375 = vmatprep.mubr.msk.f32.mxu1 %vm3808_vm1, %v3809_v25 }
 0x82a   :  { %3376 = vmatmul.mubr.msk.f32.gmra.mrb[58].mxu1 %vm362_vm5, %v2160_v37 }
 0x82b   :  { %3409 = vmatprep.mubr.msk.f32.mxu1 %vm3808_vm1, %v3809_v25 }
 0x888   :  { %v726_v61 = vpop.f32.mrb[18].mxu1 }
 0x889   :  { %743 = vrot.lane.b32.xlu0 %v726_v61, %s3821_s3  ;;  %v3191_v13 = vpop.f32.mrb[19].mxu1 }
 0x8b0   :  { %v731_v34 = vpop.f32.mrb[20].mxu1 }
 0x8b1   :  { %745 = vrot.lane.b32.xlu1 %v731_v34, %s3821_s3  ;;  %v3194_v8 = vpop.f32.mrb[21].mxu1 }
 0x8b4   :  { %v736_v6 = vpop.f32.mrb[22].mxu1 }
 0x8b5   :  { %747 = vrot.lane.b32.xlu0 %v736_v6, %s3821_s3  ;;  %v3197_v44 = vpop.f32.mrb[23].mxu1 }
 0x8b8   :  { %v982_v4 = vpop.f32.mrb[24].mxu1 }
 0x8b9   :  { %999 = vrot.lane.b32.xlu0 %v982_v4, %s3822_s2  ;;  %v3221_v54 = vpop.f32.mrb[25].mxu1 }
 0x8bc   :  { %v987_v57 = vpop.f32.mrb[26].mxu1 }
 0x8bd   :  { %1001 = vrot.lane.b32.xlu0 %v987_v57, %s3822_s2  ;;  %v3224_v47 = vpop.f32.mrb[27].mxu1  ;;  %v3802_v57 = vld [vmem:[%s4877_s0] sm:$0xff] }
 0x8c0   :  { %v992_v45 = vpop.f32.mrb[28].mxu1 }
 0x8c1   :  { %1003 = vrot.lane.b32.xlu0 %v992_v45, %s3822_s2  ;;  %v3227_v31 = vpop.f32.mrb[29].mxu1 }
 0x8c4   :  { %v1238_v46 = vpop.f32.mrb[30].mxu1 }
 0x8c5   :  { %1255 = vrot.lane.b32.xlu0 %v1238_v46, %s3823_s28  ;;  %v3251_v39 = vpop.f32.mrb[31].mxu1 }
 0x8c6   :  { %v3803_v39 = vld [vmem:[%s4877_s0 + $0x8] sm:$0xff] }
 0x8c8   :  { %v1243_v51 = vpop.f32.mrb[32].mxu1 }
 0x8c9   :  { %1257 = vrot.lane.b32.xlu1 %v1243_v51, %s3823_s28  ;;  %v3254_v41 = vpop.f32.mrb[33].mxu1 }
 0x8cc   :  { %v1248_v10 = vpop.f32.mrb[34].mxu1 }
 0x8cd   :  { %1259 = vrot.lane.b32.xlu0 %v1248_v10, %s3823_s28  ;;  %v3257_v35 = vpop.f32.mrb[35].mxu1 }
 0x8d0   :  { %v1496_v33 = vpop.f32.mrb[36].mxu1 }
 0x8d1   :  { %1510 = vst.msk [vmem:[#allocation2 + $0x11] sm:$0xff] %vm266_vm3, %v1496_v33  ;;  %v3281_v48 = vpop.f32.mrb[37].mxu1 }
 0x8d2   :  { %v3804_v48 = vld [vmem:[%s4877_s0 + $0x10] sm:$0xff] }
 0x8d4   :  { %v1501_v42 = vpop.f32.mrb[38].mxu1 }
 0x8d5   :  { %1511 = vst.msk [vmem:[#allocation2 + $0x19] sm:$0xff] %vm266_vm3, %v1501_v42  ;;  %v3284_v52 = vpop.f32.mrb[39].mxu1 }
 0x8d8   :  { %v1506_v43 = vpop.f32.mrb[40].mxu1 }
 0x8d9   :  { %1512 = vst.msk [vmem:[#allocation2 + $0x21] sm:$0x1] %vm499_vm9, %v1506_v43  ;;  %v3287_v55 = vpop.f32.mrb[41].mxu1 }
 0x8dd   :  { %v1738_v38 = vpop.f32.mrb[42].mxu1 }
 0x8de   :  { %1755 = vrot.lane.b32.xlu1 %v1738_v38, %s3821_s3  ;;  %v3311_v50 = vpop.f32.mrb[43].mxu1 }
 0x8df   :  { %v3805_v50 = vld [vmem:[%s4877_s0 + $0x18] sm:$0xff] }
 0x8e1   :  { %v1743_v49 = vpop.f32.mrb[44].mxu1 }
 0x8e2   :  { %1757 = vrot.lane.b32.xlu0 %v1743_v49, %s3821_s3  ;;  %v3314_v0 = vpop.f32.mrb[45].mxu1 }
 0x8e5   :  { %v1748_v18 = vpop.f32.mrb[46].mxu1 }
 0x8e6   :  { %v3317_v7 = vpop.f32.mrb[47].mxu1 }
 0x8e9   :  { %v1992_v58 = vpop.f32.mrb[48].mxu1 }
 0x8ea   :  { %2009 = vrot.lane.b32.xlu1 %v1992_v58, %s3822_s2  ;;  %v3341_v5 = vpop.f32.mrb[49].mxu1 }
 0x8eb   :  { %v3806_v5 = vld [vmem:[%s4877_s0 + $0x20] sm:$0x3] }
 0x8ed   :  { %v1997_v60 = vpop.f32.mrb[50].mxu1 }
 0x8ee   :  { %2011 = vrot.lane.b32.xlu1 %v1997_v60, %s3822_s2  ;;  %v3344_v62 = vpop.f32.mrb[51].mxu1 }
 0x8f1   :  { %v2002_v15 = vpop.f32.mrb[52].mxu1 }
 0x8f2   :  { %v3347_v28 = vpop.f32.mrb[53].mxu1 }
 0x8f5   :  { %v2246_v63 = vpop.f32.mrb[54].mxu1 }
 0x8f6   :  { %2263 = vrot.lane.b32.xlu1 %v2246_v63, %s3823_s28  ;;  %v3371_v12 = vpop.f32.mrb[55].mxu1 }
 0x8f9   :  { %v2251_v1 = vpop.f32.mrb[56].mxu1 }
 0x8fa   :  { %1759 = vrot.lane.b32.xlu1 %v1748_v18, %s3821_s3  ;;  %2265 = vrot.lane.b32.xlu0 %v2251_v1, %s3823_s28  ;;  %v3374_v32 = vpop.f32.mrb[57].mxu1 }
 0x8fb   :  { %v744_v23 = vpop.permute.xlu0 %743 }
 0x8fc   :  { %753 = vst.msk [vmem:[#allocation2] sm:$0xff] %vm752_vm10, %v744_v23 }
 0x8fd   :  { %v2256_v24 = vpop.f32.mrb[58].mxu1 }
 0x8fe   :  { %2013 = vrot.lane.b32.xlu0 %v2002_v15, %s3822_s2  ;;  %2267 = vrot.lane.b32.xlu1 %v2256_v24, %s3823_s28  ;;  %v3377_v56 = vpop.f32.mrb[59].mxu1 }
 0x923   :  { %v746_v3 = vpop.permute.xlu1 %745 }
 0x924   :  { %754 = vst.msk [vmem:[#allocation2 + $0x8] sm:$0xff] %vm752_vm10, %v746_v3 }
 0x927   :  { %v748_v9 = vpop.permute.xlu0 %747 }
 0x928   :  { %756 = vst.msk [vmem:[#allocation2 + $0x10] sm:$0x1] %vm755_vm11, %v748_v9  ;;  %v2490_v9 = vld [vmem:[%s4884_s9] sm:$0xff] }
 0x92b   :  { %v1000_v16 = vpop.permute.xlu0 %999 }
 0x92c   :  { %1009 = vst.msk [vmem:[#allocation2] sm:$0xff] %vm1008_vm12, %v1000_v16  ;;  %v2491_v16 = vld [vmem:[%s4884_s9 + $0x8] sm:$0xff] }
 0x92f   :  { %v1002_v36 = vpop.permute.xlu0 %1001 }
 0x930   :  { %1010 = vst.msk [vmem:[#allocation2 + $0x8] sm:$0xff] %vm1008_vm12, %v1002_v36  ;;  %v3540_v36 = vpack.c.bf16 %v2491_v16, %v2490_v9  ;;  %v2741_v16 = vld [vmem:[%s4887_s11] sm:$0xff] }
 0x932   :  { %3541 = vmatpush3.bf16.msra.mxu1 %v3540_v36  ;;  %v2742_v36 = vld [vmem:[%s4887_s11 + $0x8] sm:$0xff] }
 0x933   :  { %v1004_v17 = vpop.permute.xlu0 %1003  ;;  %3542 = vmatprep.subr.bf16.mxu1 %v3807_v21 }
 0x934   :  { %1012 = vst.msk [vmem:[#allocation2 + $0x10] sm:$0x1] %vm1011_vm13, %v1004_v17  ;;  %v2492_v17 = vld [vmem:[%s4884_s9 + $0x10] sm:$0xff] }
 0x937   :  { %v1256_v27 = vpop.permute.xlu0 %1255 }
 0x938   :  { %1265 = vst.msk [vmem:[#allocation2] sm:$0xff] %vm1264_vm14, %v1256_v27  ;;  %v2493_v27 = vld [vmem:[%s4884_s9 + $0x18] sm:$0xff] }
 0x93b   :  { %v1258_v19 = vpop.permute.xlu1 %1257 }
 0x93c   :  { %1266 = vst.msk [vmem:[#allocation2 + $0x8] sm:$0xff] %vm1264_vm14, %v1258_v19  ;;  %v3543_v19 = vpack.c.bf16 %v2493_v27, %v2492_v17  ;;  %v3546_v17 = vpack.c.bf16 %v2742_v36, %v2741_v16  ;;  %v2743_v27 = vld [vmem:[%s4887_s11 + $0x10] sm:$0xff] }
 0x93e   :  { %3544 = vmatpush3.bf16.msra.mxu1 %v3543_v19  ;;  %v2744_v19 = vld [vmem:[%s4887_s11 + $0x18] sm:$0xff] }
 0x93f   :  { %v1260_v20 = vpop.permute.xlu0 %1259  ;;  %v2275_v11 = vld [vmem:[#allocation2] sm:$0xff] }
 0x940   :  { %1268 = vst.msk [vmem:[#allocation2 + $0x10] sm:$0x1] %vm1267_vm15, %v1260_v20  ;;  %3387 = vmatmul.mubr.msk.f32.vlgmr.msra.gmra.mrb[46].mxu0 %vm51_vm0, %v2275_v11 }
 0x941   :  { %3389 = vmatprep.mubr.msk.f32.mxu0 %vm3808_vm1, %v3809_v25  ;;  %3547 = vmatpush3.bf16.msra.mxu0 %v3546_v17 }
 0x942   :  { %3548 = vmatprep.subr.bf16.mxu0 %v3807_v21 }
 0x943   :  { %v2276_v59 = vld [vmem:[#allocation2 + $0x8] sm:$0xff] }
 0x944   :  { %3390 = vmatmul.mubr.msk.f32.gmra.mrb[48].mxu0 %vm51_vm0, %v2276_v59 }
 0x945   :  { %3392 = vmatprep.mubr.msk.f32.mxu0 %vm3808_vm1, %v3809_v25 }
 0x950   :  { %v1756_v2 = vpop.permute.xlu1 %1755 }
 0x951   :  { %1764 = vst.msk [vmem:[#allocation2 + $0x11] sm:$0xff] %vm752_vm10, %v1756_v2 }
 0x954   :  { %v1758_v26 = vpop.permute.xlu0 %1757 }
 0x955   :  { %1765 = vst.msk [vmem:[#allocation2 + $0x19] sm:$0xff] %vm752_vm10, %v1758_v26 }
 0x95c   :  { %v2010_v37 = vpop.permute.xlu1 %2009 }
 0x95d   :  { %2018 = vst.msk [vmem:[#allocation2 + $0x11] sm:$0xff] %vm1008_vm12, %v2010_v37 }
 0x960   :  { %v2012_v61 = vpop.permute.xlu1 %2011 }
 0x961   :  { %2019 = vst.msk [vmem:[#allocation2 + $0x19] sm:$0xff] %vm1008_vm12, %v2012_v61 }
 0x968   :  { %v2264_v13 = vpop.permute.xlu1 %2263 }
 0x969   :  { %2272 = vst.msk [vmem:[#allocation2 + $0x11] sm:$0xff] %vm1264_vm14, %v2264_v13 }
 0x96c   :  { %v1760_v34 = vpop.permute.xlu1 %1759  ;;  %v2266_v8 = vpop.permute.xlu0 %2265 }
 0x96d   :  { %1766 = vst.msk [vmem:[#allocation2 + $0x21] sm:$0x1] %vm755_vm11, %v1760_v34 }
 0x96e   :  { %2273 = vst.msk [vmem:[#allocation2 + $0x19] sm:$0xff] %vm1264_vm14, %v2266_v8 }
 0x970   :  { %v2014_v6 = vpop.permute.xlu0 %2013  ;;  %v2268_v44 = vpop.permute.xlu1 %2267  ;;  %v2277_v22 = vld [vmem:[#allocation2 + $0x10] sm:$0xff] }
 0x971   :  { %2020 = vst.msk [vmem:[#allocation2 + $0x21] sm:$0x1] %vm1011_vm13, %v2014_v6  ;;  %3393 = vmatmul.mubr.msk.f32.gmra.mrb[50].mxu0 %vm51_vm0, %v2277_v22 }
 0x972   :  { %2274 = vst.msk [vmem:[#allocation2 + $0x21] sm:$0x1] %vm1267_vm15, %v2268_v44  ;;  %3395 = vmatprep.mubr.msk.f32.mxu0 %vm3808_vm1, %v3809_v25 }
 0x975   :  { %v2278_v29 = vld [vmem:[#allocation2 + $0x18] sm:$0xff] }
 0x976   :  { %3396 = vmatmul.mubr.msk.f32.gmra.mrb[52].mxu0 %vm51_vm0, %v2278_v29 }
 0x977   :  { %3398 = vmatprep.mubr.msk.f32.mxu0 %vm3808_vm1, %v3809_v25 }
 0x979   :  { %v2279_v4 = vld [vmem:[#allocation2 + $0x20] sm:$0x3] }
 0x97a   :  { %3399 = vmatmul.mubr.msk.f32.gmra.mrb[54].mxu0 %vm51_vm0, %v2279_v4 }
 0x97b   :  { %3456 = vmatprep.mubr.msk.f32.mxu0 %vm3808_vm1, %v3809_v25 }
 0xa13   :  { %v2372_v54 = vpop.f32.mrb[46].mxu0 }
 0xa14   :  { %v2373_v30 = vadd.f32 %v2956_v40, %v2372_v54  ;;  %v3388_v14 = vpop.f32.mrb[47].mxu0 }
 0xa16   :  { %v4678_v53 = vadd.f32 %v3802_v57, %v2373_v30 }
 0xa17   :  { %v2377_v47 = vpop.f32.mrb[48].mxu0 }
 0xa18   :  { %v2378_v45 = vadd.f32 %v2956_v40, %v2377_v47  ;;  %v3391_v31 = vpop.f32.mrb[49].mxu0  ;;  %v2403_v46 = vsel %vm51_vm0, %v4678_v53, 0.0 }
 0xa19   :  { %2404 = vadd.xlane.f32.xlu0 %v2403_v46  ;;  %v2962_v31 = vld [vmem:[%s4885_s7] ss:$0 sm:$0xff] }
 0xa1a   :  { %v4685_v51 = vadd.f32 %v3803_v39, %v2378_v45  ;;  %v2963_v39 = vld [vmem:[%s4886_s8] ss:$0 sm:$0xff] }
 0xa1c   :  { %v2406_v41 = vsel %vm51_vm0, %v4685_v51, 0.0 }
 0xa1d   :  { %2407 = vadd.xlane.f32.xlu1 %v2406_v41 }
 0xa44   :  { %v2382_v10 = vpop.f32.mrb[50].mxu0 }
 0xa45   :  { %v2383_v35 = vadd.f32 %v2956_v40, %v2382_v10  ;;  %v3394_v33 = vpop.f32.mrb[51].mxu0 }
 0xa47   :  { %v4692_v42 = vadd.f32 %v3804_v48, %v2383_v35 }
 0xa49   :  { %v2387_v52 = vpop.f32.mrb[52].mxu0  ;;  %v2409_v38 = vsel %vm51_vm0, %v4692_v42, 0.0 }
 0xa4a   :  { %v2388_v43 = vadd.f32 %v2956_v40, %v2387_v52  ;;  %v3397_v55 = vpop.f32.mrb[53].mxu0  ;;  %2410 = vadd.xlane.f32.xlu0 %v2409_v38 }
 0xa4c   :  { %v4699_v49 = vadd.f32 %v3805_v50, %v2388_v43 }
 0xa4d   :  { %v2392_v0 = vpop.f32.mrb[54].mxu0 }
 0xa4e   :  { %v2412_v18 = vsel %vm51_vm0, %v4699_v49, 0.0  ;;  %v2393_v7 = vadd.f32 %v2956_v40, %v2392_v0  ;;  %v3400_v58 = vpop.f32.mrb[55].mxu0 }
 0xa4f   :  { %2413 = vadd.xlane.f32.xlu0 %v2412_v18 }
 0xa50   :  { %v4706_v60 = vadd.f32 %v3806_v5, %v2393_v7 }
 0xa52   :  { %v2415_v62 = vsel %vm64_vm2, %v4706_v60, 0.0 }
 0xa53   :  { %2416 = vadd.xlane.f32.xlu0 %v2415_v62 }
 0xaa6   :  { %v2405_v15 = vpop.xlane.xlu0 %2404 }
 0xaa7   :  { %v2418_v28 = vmul.f32 0.03125, %v2405_v15 }
 0xaa9   :  { %v2423_v63 = vsub.f32 %v4678_v53, %v2418_v28 }
 0xaaa   :  { %v2408_v12 = vpop.xlane.xlu1 %2407 }
 0xaab   :  { %v2419_v1 = vmul.f32 0.03125, %v2408_v12  ;;  %v2428_v32 = vmul.f32 %v2423_v63, %v2423_v63 }
 0xaad   :  { %v2424_v23 = vsub.f32 %v4685_v51, %v2419_v1  ;;  %v2433_v24 = vsel %vm51_vm0, %v2428_v32, 0.0 }
 0xaae   :  { %2434 = vadd.xlane.f32.xlu1 %v2433_v24 }
 0xaaf   :  { %v2429_v56 = vmul.f32 %v2424_v23, %v2424_v23 }
 0xab1   :  { %v2436_v3 = vsel %vm51_vm0, %v2429_v56, 0.0 }
 0xab2   :  { %2437 = vadd.xlane.f32.xlu0 %v2436_v3 }
 0xad7   :  { %v2411_v20 = vpop.xlane.xlu0 %2410 }
 0xad8   :  { %v2420_v11 = vmul.f32 0.03125, %v2411_v20  ;;  %v3549_v20 = vpack.c.bf16 %v2744_v19, %v2743_v27 }
 0xada   :  { %v2425_v59 = vsub.f32 %v4692_v42, %v2420_v11  ;;  %3550 = vmatpush3.bf16.msra.mxu0 %v3549_v20  ;;  %v2745_v11 = vld [vmem:[%s4887_s11 + $0x20] sm:$0xff] }
 0xadb   :  { %3551 = vmatprep.subr.bf16.mxu0 %v3807_v21 }
 0xadc   :  { %v2414_v2 = vpop.xlane.xlu0 %2413  ;;  %v2430_v37 = vmul.f32 %v2425_v59, %v2425_v59 }
 0xadd   :  { %v2421_v26 = vmul.f32 0.03125, %v2414_v2 }
 0xade   :  { %v2439_v13 = vsel %vm51_vm0, %v2430_v37, 0.0  ;;  %v2748_v37 = vld [vmem:[%s4887_s11 + $0x38] sm:$0xff] }
 0xadf   :  { %v2426_v61 = vsub.f32 %v4699_v49, %v2421_v26  ;;  %2440 = vadd.xlane.f32.xlu1 %v2439_v13  ;;  %v2747_v26 = vld [vmem:[%s4887_s11 + $0x30] sm:$0xff]  ;;  %v2749_v13 = vld [vmem:[%s4887_s11 + $0x40] sm:$0xff] }
 0xae0   :  { %v2417_v34 = vpop.xlane.xlu0 %2416 }
 0xae1   :  { %v2431_v8 = vmul.f32 %v2426_v61, %v2426_v61  ;;  %v2422_v6 = vmul.f32 0.03125, %v2417_v34  ;;  %v2750_v34 = vld [vmem:[%s4887_s11 + $0x48] sm:$0xff] }
 0xae3   :  { %v2442_v44 = vsel %vm51_vm0, %v2431_v8, 0.0  ;;  %v2427_v22 = vsub.f32 %v4706_v60, %v2422_v6  ;;  %v3558_v8 = vpack.c.bf16 %v2750_v34, %v2749_v13  ;;  %v2751_v6 = vld [vmem:[%s4887_s11 + $0x50] sm:$0xff] }
 0xae4   :  { %2443 = vadd.xlane.f32.xlu0 %v2442_v44  ;;  %v2752_v44 = vld [vmem:[%s4887_s11 + $0x58] sm:$0xff] }
 0xae5   :  { %v2432_v29 = vmul.f32 %v2427_v22, %v2427_v22 }
 0xae7   :  { %v2445_v4 = vsel %vm64_vm2, %v2432_v29, 0.0  ;;  %v2753_v29 = vld [vmem:[%s4887_s11 + $0x60] sm:$0xff] }
 0xae8   :  { %2446 = vadd.xlane.f32.xlu1 %v2445_v4  ;;  %v2754_v4 = vld [vmem:[%s4887_s11 + $0x68] sm:$0xff] }
 0xb3b   :  { %v2435_v40 = vpop.xlane.xlu1 %2434 }
 0xb3c   :  { %v2448_v54 = vmul.f32 0.03125, %v2435_v40  ;;  %v3564_v40 = vpack.c.bf16 %v2754_v4, %v2753_v29 }
 0xb3e   :  { %v2453_v30 = vadd.f32 1e-06, %v2448_v54  ;;  %v2755_v54 = vld [vmem:[%s4887_s11 + $0x70] sm:$0xff] }
 0xb3f   :  { %v2438_v14 = vpop.xlane.xlu0 %2437 }
 0xb40   :  { %3772 = vrsqrt.f32 %v2453_v30  ;;  %v2449_v57 = vmul.f32 0.03125, %v2438_v14  ;;  %v2756_v30 = vld [vmem:[%s4887_s11 + $0x78] sm:$0xff] }
 0xb41   :  { %v3567_v14 = vpack.c.bf16 %v2756_v30, %v2755_v54 }
 0xb42   :  { %v2454_v47 = vadd.f32 1e-06, %v2449_v57  ;;  %v4810_v57 = vld [vmem:[%s4888_s10] ss:$0 sm:$0xff] }
 0xb44   :  { %3774 = vrsqrt.f32 %v2454_v47 }
 0xb4a   :  { %v3773_v45 = vpop.eup %3772 }
 0xb4b   :  { %v2463_v46 = vmul.f32 %v3773_v45, %v2423_v63 }
 0xb4d   :  { %v2474_v41 = vmul.f32 %v2962_v31, %v2463_v46 }
 0xb4e   :  { %v3775_v10 = vpop.eup %3774 }
 0xb4f   :  { %v2485_v35 = vadd.f32 %v2963_v39, %v2474_v41  ;;  %v2464_v33 = vmul.f32 %v3775_v10, %v2424_v23 }
 0xb51   :  { %3410 = vmatmul.mubr.msk.f32.vlgmr.msra.gmra.mrb[60].mxu1 %vm51_vm0, %v2485_v35  ;;  %v2475_v48 = vmul.f32 %v2962_v31, %v2464_v33 }
 0xb52   :  { %3412 = vmatprep.mubr.msk.f32.mxu1 %vm3808_vm1, %v3809_v25 }
 0xb53   :  { %v2486_v52 = vadd.f32 %v2963_v39, %v2475_v48 }
 0xb55   :  { %3413 = vmatmul.mubr.msk.f32.gmra.mrb[62].mxu1 %vm51_vm0, %v2486_v52 }
 0xb56   :  { %3415 = vmatprep.mubr.msk.f32.mxu1 %vm3808_vm1, %v3809_v25 }
 0xb6c   :  { %v2441_v43 = vpop.xlane.xlu1 %2440 }
 0xb6d   :  { %v2450_v55 = vmul.f32 0.03125, %v2441_v43 }
 0xb6f   :  { %v2455_v38 = vadd.f32 1e-06, %v2450_v55 }
 0xb71   :  { %v2444_v50 = vpop.xlane.xlu0 %2443  ;;  %3776 = vrsqrt.f32 %v2455_v38 }
 0xb72   :  { %v2451_v0 = vmul.f32 0.03125, %v2444_v50 }
 0xb74   :  { %v2456_v18 = vadd.f32 1e-06, %v2451_v0 }
 0xb75   :  { %v2447_v7 = vpop.xlane.xlu1 %2446 }
 0xb76   :  { %3778 = vrsqrt.f32 %v2456_v18  ;;  %v2452_v58 = vmul.f32 0.03125, %v2447_v7 }
 0xb78   :  { %v2457_v5 = vadd.f32 1e-06, %v2452_v58 }
 0xb7a   :  { %3780 = vrsqrt.f32 %v2457_v5 }
 0xb7b   :  { %v3777_v62 = vpop.eup %3776 }
 0xb7c   :  { %v2465_v15 = vmul.f32 %v3777_v62, %v2425_v59  ;;  %v2746_v59 = vld [vmem:[%s4887_s11 + $0x28] sm:$0xff] }
 0xb7d   :  { %v3552_v2 = vpack.c.bf16 %v2746_v59, %v2745_v11 }
 0xb7e   :  { %v2476_v28 = vmul.f32 %v2962_v31, %v2465_v15 }
 0xb7f   :  { %3553 = vmatpush3.bf16.msra.mxu0 %v3552_v2 }
 0xb80   :  { %v3779_v63 = vpop.eup %3778  ;;  %v2487_v12 = vadd.f32 %v2963_v39, %v2476_v28  ;;  %3554 = vmatprep.subr.bf16.mxu0 %v3807_v21 }
 0xb81   :  { %v2466_v1 = vmul.f32 %v3779_v63, %v2426_v61  ;;  %v3555_v61 = vpack.c.bf16 %v2748_v37, %v2747_v26 }
 0xb82   :  { %3416 = vmatmul.mubr.msk.f32.gmra.mrb[64].mxu1 %vm51_vm0, %v2487_v12 }
 0xb83   :  { %v2477_v32 = vmul.f32 %v2962_v31, %v2466_v1  ;;  %3418 = vmatprep.mubr.msk.f32.mxu1 %vm3808_vm1, %v3809_v25  ;;  %3556 = vmatpush3.bf16.msra.mxu0 %v3555_v61 }
 0xb84   :  { %v3781_v23 = vpop.eup %3780  ;;  %3557 = vmatprep.subr.bf16.mxu0 %v3807_v21 }
 0xb85   :  { %v2488_v24 = vadd.f32 %v2963_v39, %v2477_v32  ;;  %v2467_v56 = vmul.f32 %v3781_v23, %v2427_v22  ;;  %v3561_v22 = vpack.c.bf16 %v2752_v44, %v2751_v6 }
 0xb87   :  { %3419 = vmatmul.mubr.msk.f32.gmra.mrb[66].mxu1 %vm51_vm0, %v2488_v24  ;;  %v2478_v3 = vmul.f32 %v2962_v31, %v2467_v56  ;;  %3559 = vmatpush3.bf16.msra.mxu0 %v3558_v8 }
 0xb88   :  { %3421 = vmatprep.mubr.msk.f32.mxu1 %vm3808_vm1, %v3809_v25  ;;  %3560 = vmatprep.subr.bf16.mxu0 %v3807_v21 }
 0xb89   :  { %v2489_v9 = vadd.f32 %v2963_v39, %v2478_v3 }
 0xb8b   :  { %3422 = vmatmul.mubr.msk.f32.gmra.mrb[68].mxu1 %vm51_vm0, %v2489_v9  ;;  %3562 = vmatpush3.bf16.msra.mxu0 %v3561_v22 }
 0xb8c   :  { %3563 = vmatprep.subr.bf16.mxu0 %v3807_v21 }
 0xb8f   :  { %3565 = vmatpush3.bf16.msra.mxu0 %v3564_v40 }
 0xb90   :  { %3566 = vmatprep.subr.bf16.mxu0 %v3807_v21 }
 0xb93   :  { %3568 = vmatpush3.bf16.msra.mxu0 %v3567_v14 }
 0xc24   :  { %v2582_v47 = vpop.f32.mrb[60].mxu1 }
 0xc25   :  { %v2583_v45 = vadd.f32 %v4810_v57, %v2582_v47  ;;  %v3411_v31 = vpop.f32.mrb[61].mxu1 }
 0xc27   :  { %v2611_v21 = vmul.f32 0.70710677, %v2583_v45  ;;  %v2606_v6 = vmul.f32 0.5, %v2583_v45 }
 0xc28   :  { %v2587_v46 = vpop.f32.mrb[62].mxu1 }
 0xc29   :  { %v2616_v39 = vand.u32 2147483647, %v2611_v21  ;;  %v2588_v41 = vadd.f32 %v4810_v57, %v2587_v46  ;;  %v3414_v10 = vpop.f32.mrb[63].mxu1  ;;  %vm2716_vm3 = vcmp.ge.f32.partialorder %v2611_v21, 0.0 }
 0xc2b   :  { %v2621_v35 = vmul.f32 0.3275911, %v2616_v39  ;;  %v2612_v33 = vmul.f32 0.70710677, %v2588_v41  ;;  %v2686_v38 = vsub.f32 0.0, %v2616_v39  ;;  %v2607_v14 = vmul.f32 0.5, %v2588_v41 }
 0xc2d   :  { %v2626_v48 = vadd.f32 1.0, %v2621_v35  ;;  %v2617_v52 = vand.u32 2147483647, %v2612_v33  ;;  %v2691_v0 = vmul.f32 %v2686_v38, %v2616_v39  ;;  %vm2717_vm4 = vcmp.ge.f32.partialorder %v2612_v33, 0.0 }
 0xc2f   :  { %3782 = vrcp.f32 %v2626_v48  ;;  %v2622_v43 = vmul.f32 0.3275911, %v2617_v52  ;;  %v2687_v18 = vsub.f32 0.0, %v2617_v52  ;;  %v2696_v62 = vmul.f32 1.442695, %v2691_v0 }
 0xc31   :  { %v2627_v55 = vadd.f32 1.0, %v2622_v43  ;;  %v2692_v15 = vmul.f32 %v2687_v18, %v2617_v52 }
 0xc33   :  { %3784 = vrcp.f32 %v2627_v55  ;;  %v2698_v32 = vmul.f32 1.442695, %v2692_v15 }
 0xc34   :  { %3786 = vpow2.f32 %v2696_v62 }
 0xc35   :  { %3788 = vpow2.f32 %v2698_v32 }
 0xc39   :  { %v3783_v50 = vpop.eup %3782 }
 0xc3a   :  { %v2641_v7 = vmul.f32 1.0614054, %v3783_v50 }
 0xc3c   :  { %v2646_v58 = vadd.f32 -1.4531521, %v2641_v7 }
 0xc3d   :  { %v3785_v5 = vpop.eup %3784 }
 0xc3e   :  { %v2651_v28 = vmul.f32 %v3783_v50, %v2646_v58  ;;  %v2642_v63 = vmul.f32 1.0614054, %v3785_v5  ;;  %v3787_v20 = vpop.eup %3786 }
 0xc3f   :  { %v3789_v37 = vpop.eup %3788 }
 0xc40   :  { %v2656_v12 = vadd.f32 1.4214138, %v2651_v28  ;;  %v2647_v1 = vadd.f32 -1.4531521, %v2642_v63 }
 0xc42   :  { %v2661_v23 = vmul.f32 %v3783_v50, %v2656_v12  ;;  %v2652_v24 = vmul.f32 %v3785_v5, %v2647_v1 }
 0xc44   :  { %v2666_v56 = vadd.f32 -0.28449672, %v2661_v23  ;;  %v2657_v3 = vadd.f32 1.4214138, %v2652_v24 }
 0xc46   :  { %v2671_v9 = vmul.f32 %v3783_v50, %v2666_v56  ;;  %v2662_v16 = vmul.f32 %v3785_v5, %v2657_v3 }
 0xc48   :  { %v2676_v36 = vadd.f32 0.2548296, %v2671_v9  ;;  %v2667_v17 = vadd.f32 -0.28449672, %v2662_v16 }
 0xc4a   :  { %v2681_v27 = vmul.f32 %v3783_v50, %v2676_v36  ;;  %v2672_v19 = vmul.f32 %v3785_v5, %v2667_v17 }
 0xc4c   :  { %v2706_v11 = vmul.f32 %v3787_v20, %v2681_v27  ;;  %v2677_v59 = vadd.f32 0.2548296, %v2672_v19 }
 0xc4e   :  { %v2711_v2 = vsub.f32 1.0, %v2706_v11  ;;  %v2682_v26 = vmul.f32 %v3785_v5, %v2677_v59 }
 0xc50   :  { %v2721_v61 = vsub.f32 0.0, %v2711_v2  ;;  %v2707_v13 = vmul.f32 %v3789_v37, %v2682_v26 }
 0xc52   :  { %v2726_v34 = vsel %vm2716_vm3, %v2711_v2, %v2721_v61  ;;  %v2712_v8 = vsub.f32 1.0, %v2707_v13 }
 0xc53   :  { %v2731_v44 = vadd.f32 1.0, %v2726_v34 }
 0xc54   :  { %v2722_v22 = vsub.f32 0.0, %v2712_v8 }
 0xc55   :  { %v2736_v29 = vmul.f32 %v2731_v44, %v2606_v6  ;;  %v2592_v4 = vpop.f32.mrb[64].mxu1 }
 0xc56   :  { %v4815_v40 = vadd.f32 %v4810_v57, %v2592_v4  ;;  %v3417_v54 = vpop.f32.mrb[65].mxu1  ;;  %v2727_v30 = vsel %vm2717_vm4, %v2712_v8, %v2722_v22 }
 0xc57   :  { %3457 = vmatmul.mubr.f32.vlgmr.msra.gmra.mrb[56].mxu0 %v2736_v29  ;;  %v2732_v47 = vadd.f32 1.0, %v2727_v30 }
 0xc58   :  { %v4818_v31 = vmul.f32 0.70710677, %v4815_v40  ;;  %3459 = vmatprep.mubr.msk.f32.mxu0 %vm3808_vm1, %v3809_v25 }
 0xc59   :  { %v2737_v21 = vmul.f32 %v2732_v47, %v2607_v14 }
 0xc5a   :  { %v2597_v45 = vpop.f32.mrb[66].mxu1  ;;  %v2618_v46 = vand.u32 2147483647, %v4818_v31  ;;  %vm2718_vm5 = vcmp.ge.f32.partialorder %v4818_v31, 0.0 }
 0xc5b   :  { %v4824_v39 = vadd.f32 %v4810_v57, %v2597_v45  ;;  %v3420_v10 = vpop.f32.mrb[67].mxu1  ;;  %3460 = vmatmul.mubr.f32.gmra.mrb[58].mxu0 %v2737_v21 }
 0xc5c   :  { %v2623_v35 = vmul.f32 0.3275911, %v2618_v46  ;;  %3462 = vmatprep.mubr.msk.f32.mxu0 %vm3808_vm1, %v3809_v25  ;;  %v2688_v58 = vsub.f32 0.0, %v2618_v46 }
 0xc5d   :  { %v4827_v41 = vmul.f32 0.70710677, %v4824_v39 }
 0xc5e   :  { %v2628_v33 = vadd.f32 1.0, %v2623_v35  ;;  %v2602_v52 = vpop.f32.mrb[68].mxu1  ;;  %v2693_v15 = vmul.f32 %v2688_v58, %v2618_v46 }
 0xc5f   :  { %v2619_v48 = vand.u32 2147483647, %v4827_v41  ;;  %v4833_v43 = vadd.f32 %v4810_v57, %v2602_v52  ;;  %v3423_v55 = vpop.f32.mrb[69].mxu1  ;;  %vm2719_vm6 = vcmp.ge.f32.partialorder %v4827_v41, 0.0 }
 0xc60   :  { %3790 = vrcp.f32 %v2628_v33  ;;  %v2700_v1 = vmul.f32 1.442695, %v2693_v15  ;;  %v2608_v55 = vmul.f32 0.5, %v4815_v40  ;;  %v2609_v15 = vmul.f32 0.5, %v4824_v39  ;;  %v2970_v39 = vld [vmem:[%s4889_s12] ss:$0 sm:$0xff] }
 0xc61   :  { %v2624_v38 = vmul.f32 0.3275911, %v2619_v48  ;;  %v4836_v50 = vmul.f32 0.70710677, %v4833_v43  ;;  %v2689_v28 = vsub.f32 0.0, %v2619_v48 }
 0xc63   :  { %v2629_v0 = vadd.f32 1.0, %v2624_v38  ;;  %v2620_v18 = vand.u32 2147483647, %v4836_v50  ;;  %v2694_v32 = vmul.f32 %v2689_v28, %v2619_v48  ;;  %vm2720_vm7 = vcmp.ge.f32.partialorder %v4836_v50, 0.0 }
 0xc65   :  { %3792 = vrcp.f32 %v2629_v0  ;;  %v2625_v7 = vmul.f32 0.3275911, %v2620_v18  ;;  %v2690_v23 = vsub.f32 0.0, %v2620_v18  ;;  %v2702_v16 = vmul.f32 1.442695, %v2694_v32 }
 0xc67   :  { %v2630_v5 = vadd.f32 1.0, %v2625_v7  ;;  %v2695_v17 = vmul.f32 %v2690_v23, %v2620_v18 }
 0xc69   :  { %3794 = vrcp.f32 %v2630_v5  ;;  %v2704_v26 = vmul.f32 1.442695, %v2695_v17 }
 0xc6a   :  { %v3791_v62 = vpop.eup %3790  ;;  %3796 = vpow2.f32 %v2700_v1 }
 0xc6b   :  { %v2643_v63 = vmul.f32 1.0614054, %v3791_v62  ;;  %3798 = vpow2.f32 %v2702_v16 }
 0xc6c   :  { %3800 = vpow2.f32 %v2704_v26 }
 0xc6d   :  { %v2648_v57 = vadd.f32 -1.4531521, %v2643_v63 }
 0xc6f   :  { %v3793_v12 = vpop.eup %3792  ;;  %v2653_v24 = vmul.f32 %v3791_v62, %v2648_v57 }
 0xc70   :  { %v2644_v56 = vmul.f32 1.0614054, %v3793_v12 }
 0xc71   :  { %v2658_v3 = vadd.f32 1.4214138, %v2653_v24 }
 0xc72   :  { %v2649_v9 = vadd.f32 -1.4531521, %v2644_v56 }
 0xc73   :  { %v3795_v36 = vpop.eup %3794  ;;  %v2663_v27 = vmul.f32 %v3791_v62, %v2658_v3 }
 0xc74   :  { %v2654_v19 = vmul.f32 %v3793_v12, %v2649_v9  ;;  %v2645_v20 = vmul.f32 1.0614054, %v3795_v36  ;;  %v3797_v29 = vpop.eup %3796 }
 0xc75   :  { %v2668_v11 = vadd.f32 -0.28449672, %v2663_v27  ;;  %v3799_v21 = vpop.eup %3798 }
 0xc76   :  { %v2659_v59 = vadd.f32 1.4214138, %v2654_v19  ;;  %v2650_v2 = vadd.f32 -1.4531521, %v2645_v20  ;;  %v3801_v18 = vpop.eup %3800 }
 0xc77   :  { %v2673_v37 = vmul.f32 %v3791_v62, %v2668_v11 }
 0xc78   :  { %v2664_v61 = vmul.f32 %v3793_v12, %v2659_v59  ;;  %v2655_v13 = vmul.f32 %v3795_v36, %v2650_v2 }
 0xc79   :  { %v2678_v34 = vadd.f32 0.2548296, %v2673_v37 }
 0xc7a   :  { %v2669_v8 = vadd.f32 -0.28449672, %v2664_v61  ;;  %v2660_v6 = vadd.f32 1.4214138, %v2655_v13 }
 0xc7b   :  { %v2683_v44 = vmul.f32 %v3791_v62, %v2678_v34 }
 0xc7c   :  { %v2674_v22 = vmul.f32 %v3793_v12, %v2669_v8  ;;  %v2665_v4 = vmul.f32 %v3795_v36, %v2660_v6 }
 0xc7d   :  { %v2708_v54 = vmul.f32 %v3797_v29, %v2683_v44 }
 0xc7e   :  { %v2679_v30 = vadd.f32 0.2548296, %v2674_v22  ;;  %v2670_v14 = vadd.f32 -0.28449672, %v2665_v4 }
 0xc7f   :  { %v2713_v47 = vsub.f32 1.0, %v2708_v54 }
 0xc80   :  { %v2684_v45 = vmul.f32 %v3793_v12, %v2679_v30  ;;  %v2675_v46 = vmul.f32 %v3795_v36, %v2670_v14  ;;  %v2610_v12 = vmul.f32 0.5, %v4833_v43 }
 0xc81   :  { %v2723_v10 = vsub.f32 0.0, %v2713_v47 }
 0xc82   :  { %v2709_v35 = vmul.f32 %v3799_v21, %v2684_v45  ;;  %v2680_v33 = vadd.f32 0.2548296, %v2675_v46 }
 0xc83   :  { %v2728_v48 = vsel %vm2718_vm5, %v2713_v47, %v2723_v10 }
 0xc84   :  { %v2714_v52 = vsub.f32 1.0, %v2709_v35  ;;  %v2733_v38 = vadd.f32 1.0, %v2728_v48  ;;  %v2685_v0 = vmul.f32 %v3795_v36, %v2680_v33 }
 0xc86   :  { %v2724_v7 = vsub.f32 0.0, %v2714_v52  ;;  %v2738_v58 = vmul.f32 %v2733_v38, %v2608_v55  ;;  %v2710_v5 = vmul.f32 %v3801_v18, %v2685_v0 }
 0xc88   :  { %v2729_v62 = vsel %vm2719_vm6, %v2714_v52, %v2724_v7  ;;  %3463 = vmatmul.mubr.f32.gmra.mrb[60].mxu0 %v2738_v58  ;;  %v2715_v63 = vsub.f32 1.0, %v2710_v5 }
 0xc89   :  { %v2734_v28 = vadd.f32 1.0, %v2729_v62  ;;  %3465 = vmatprep.mubr.msk.f32.mxu0 %vm3808_vm1, %v3809_v25 }
 0xc8a   :  { %v2725_v57 = vsub.f32 0.0, %v2715_v63 }
 0xc8b   :  { %v2739_v31 = vmul.f32 %v2734_v28, %v2609_v15 }
 0xc8c   :  { %v2730_v40 = vsel %vm2720_vm7, %v2715_v63, %v2725_v57 }
 0xc8d   :  { %3466 = vmatmul.mubr.f32.gmra.mrb[62].mxu0 %v2739_v31  ;;  %v2735_v41 = vadd.f32 1.0, %v2730_v40 }
 0xc8e   :  { %3468 = vmatprep.mubr.msk.f32.mxu0 %vm3808_vm1, %v3809_v25 }
 0xc8f   :  { %v2740_v1 = vmul.f32 %v2735_v41, %v2610_v12 }
 0xc91   :  { %3469 = vmatmul.mubr.f32.gmra.mrb[64].mxu0 %v2740_v1 }
 0xd2a   :  { %v2830_v32 = vpop.f32.mrb[56].mxu0 }
 0xd2b   :  { %v2831_v23 = vadd.f32 %v2970_v39, %v2830_v32  ;;  %v3458_v24 = vpop.f32.mrb[57].mxu0 }
 0xd2d   :  { %v2854_v56 = vadd.f32 %v2831_v23, %v4678_v53 }
 0xd2e   :  { %v2835_v50 = vpop.f32.mrb[58].mxu0 }
 0xd2f   :  { %2859 = vst.msk [vmem:[%s4890_s13] sm:$0xff] %vm51_vm0, %v2854_v56  ;;  %v2836_v43 = vadd.f32 %v2970_v39, %v2835_v50  ;;  %v3461_v25 = vpop.f32.mrb[59].mxu0 }
 0xd31   :  { %v2855_v3 = vadd.f32 %v2836_v43, %v4685_v51 }
 0xd33   :  { %2860 = vst.msk [vmem:[%s4890_s13 + $0x8] sm:$0xff] %vm51_vm0, %v2855_v3 }
 0xd5b   :  { %v2840_v9 = vpop.f32.mrb[60].mxu0 }
 0xd5c   :  { %v2841_v16 = vadd.f32 %v2970_v39, %v2840_v9  ;;  %v3464_v36 = vpop.f32.mrb[61].mxu0 }
 0xd5e   :  { %v2856_v53 = vadd.f32 %v2841_v16, %v4692_v42 }
 0xd60   :  { %v2845_v17 = vpop.f32.mrb[62].mxu0  ;;  %2861 = vst.msk [vmem:[%s4890_s13 + $0x10] sm:$0xff] %vm51_vm0, %v2856_v53 }
 0xd61   :  { %v2846_v27 = vadd.f32 %v2970_v39, %v2845_v17  ;;  %v3467_v19 = vpop.f32.mrb[63].mxu0 }
 0xd63   :  { %v2857_v51 = vadd.f32 %v2846_v27, %v4699_v49 }
 0xd64   :  { %v2850_v20 = vpop.f32.mrb[64].mxu0 }
 0xd65   :  { %2862 = vst.msk [vmem:[%s4890_s13 + $0x18] sm:$0xff] %vm51_vm0, %v2857_v51  ;;  %v2851_v11 = vadd.f32 %v2970_v39, %v2850_v20  ;;  %v3470_v59 = vpop.f32.mrb[65].mxu0 }
 0xd67   :  { %v2858_v42 = vadd.f32 %v2851_v11, %v4706_v60 }
 0xd69   :  { %2863 = vst.msk [vmem:[%s4890_s13 + $0x20] sm:$0x3] %vm64_vm2, %v2858_v42 }

</bundles_post_ra>
